<compile_context>
chip_gen: v6e
topology: v6e:2x2x1
jax: 0.10.0
libtpu: 0.0.40
codegen_flags: <defaults>
</compile_context>

<pallas_src>
import functools

import jax
import jax.numpy as jnp
from jax.experimental import pallas as pl
from jax.experimental.pallas import tpu as pltpu


_MAX_UNROLLED_ROWS = 32   # cap for fully-unrolled per-row DMA loops


def _for_each_row(tile_rows, fn):
    """fn(r) for r in [0, tile_rows): Python unroll when small, pl.loop otherwise."""
    if tile_rows <= _MAX_UNROLLED_ROWS:
        for r in range(tile_rows):
            fn(r)
    else:
        @pl.loop(0, tile_rows)
        def _(r):
            fn(r)


def _issue_row_gather(ids_ref, emb_hbm, gbuf, sem, row_base, slot, tile_rows):
    """Start one DMA per row: emb_hbm[ids[row_base + r]] -> gbuf[slot, r]."""
    def start_one(r):
        tok = ids_ref[row_base + r]
        pltpu.make_async_copy(
            emb_hbm.at[pl.ds(tok, 1), :],
            gbuf.at[slot, pl.ds(r, 1), :],
            sem.at[slot],
        ).start()
    _for_each_row(tile_rows, start_one)


def _wait_row_gather(emb_hbm, gbuf, sem, slot, tile_rows):
    """Wait for the tile_rows row copies previously issued against sem[slot]."""
    def wait_one(r):
        # Size-matching descriptor; the wait only consumes sem[slot] by one
        # row-copy's bytes.  Exactly one wait per issued start.
        pltpu.make_async_copy(
            emb_hbm.at[pl.ds(0, 1), :],
            gbuf.at[slot, pl.ds(r, 1), :],
            sem.at[slot],
        ).wait()
    _for_each_row(tile_rows, wait_one)


def _embedding_kernel(ids_ref, seed_ref, emb_hbm, pos_ref, out_ref, gbuf, sem,
                      *, seq_len, tile_rows, d_model, drop_prob, training):
    # ids_ref  : (B*S,)  int32   SMEM (scalar prefetch)
    # seed_ref : (1,)    int32   SMEM (scalar prefetch)
    # emb_hbm  : (V, D)  float32 HBM  (memory_space=pl.ANY, manual DMA gather)
    # pos_ref  : (tile_rows, D)  float32 VMEM (resident across the batch axis)
    # out_ref  : (1, tile_rows, D) VMEM
    # gbuf     : (2, tile_rows, D) VMEM scratch (double-buffered gather dest)
    # sem      : (2,) DMA semaphores (one per slot)
    st = pl.program_id(0)          # seq-tile index  (outer, "parallel")
    b = pl.program_id(1)           # batch index     (inner, "arbitrary")
    nb = pl.num_programs(1)

    row_base = b * seq_len + st * tile_rows        # flat row of this tile in ids
    slot = jax.lax.rem(b, 2)

    # Prologue of each seq-tile row: batch 0 fetches its own rows (later batch
    # steps were prefetched by the previous step).
    @pl.when(b == 0)
    def _():
        _issue_row_gather(ids_ref, emb_hbm, gbuf, sem, row_base, slot, tile_rows)

    # Prefetch the next batch's rows (same seq tile) into the other slot so the
    # gather latency hides behind this step's compute and writeback DMA.
    @pl.when(b + 1 < nb)
    def _():
        _issue_row_gather(ids_ref, emb_hbm, gbuf, sem,
                          row_base + seq_len, 1 - slot, tile_rows)

    # Wait for the current slot's row DMAs.
    _wait_row_gather(emb_hbm, gbuf, sem, slot, tile_rows)

    # ---- token embedding + positional add (f32 math) ----
    y = gbuf[slot].astype(jnp.float32) + pos_ref[...]

    # ---- inverted dropout (training only), counter-based hash PRNG ----
    if training and drop_prob > 0.0:
        row_ids = jax.lax.broadcasted_iota(jnp.int32, (tile_rows, d_model), 0)
        col_ids = jax.lax.broadcasted_iota(jnp.int32, (tile_rows, d_model), 1)
        # Counter in uint32 (wraps mod 2^32; unique per element for < 2^32 elems).
        ctr = ((row_ids.astype(jnp.uint32) + row_base.astype(jnp.uint32))
               * jnp.uint32(d_model) + col_ids.astype(jnp.uint32))
        x = ctr ^ seed_ref[0].astype(jnp.uint32)
        # lowbias32 finalizer (good avalanche for sequential counters).
        x = x ^ (x >> jnp.uint32(16))
        x = x * jnp.uint32(0x7FEB352D)
        x = x ^ (x >> jnp.uint32(15))
        x = x * jnp.uint32(0x846CA68B)
        x = x ^ (x >> jnp.uint32(16))
        thr = jnp.uint32(min(int(drop_prob * (1 << 32)), (1 << 32) - 1))
        keep = x >= thr                       # P(keep) = 1 - drop_prob
        scale = jnp.float32(1.0 / (1.0 - drop_prob))
        y = y * jnp.where(keep, scale, jnp.float32(0.0))

    out_ref[0] = y.astype(out_ref.dtype)


def make_positional_encoding(d_model, max_len):
    # Matches PositionalEncoding.__init__ exactly.
    pos = jnp.arange(0, max_len, dtype=jnp.float32)[:, None]        # (L, 1)
    _2i = jnp.arange(0, d_model, 2, dtype=jnp.float32)              # (D/2,)
    angle = pos / (10000.0 ** (_2i / d_model))                      # (L, D/2)
    pe = jnp.zeros((max_len, d_model), dtype=jnp.float32)
    pe = pe.at[:, 0::2].set(jnp.sin(angle))
    pe = pe.at[:, 1::2].set(jnp.cos(angle))
    return pe


def init_token_embedding(key, vocab_size, d_model, padding_idx=1):
    # nn.Embedding default init: N(0, 1), with the padding_idx row zeroed.
    w = jax.random.normal(key, (vocab_size, d_model), dtype=jnp.float32)
    w = w.at[padding_idx, :].set(0.0)
    return w


def _pick_tile_rows(seq_len, d_model, itemsize=4,
                    max_live_bytes=12 << 20, max_rows=256):
    """Largest sublane-aligned divisor of seq_len that keeps live VMEM small.

    Live VMEM ~= gbuf(2x) + pos(2x) + out(2x) ~= 6-7 tiles, so budget per tile
    is max_live_bytes / 7.  Rows are also capped to bound per-step DMA
    descriptor issue / loop length.
    """
    per_tile_cap = max_live_bytes // 7
    cap_rows = max(8, min(max_rows, per_tile_cap // max(1, d_model * itemsize)))
    for t in range(min(seq_len, cap_rows), 0, -1):
        if seq_len % t == 0 and (t % 8 == 0 or t == seq_len):
            return t
    return seq_len


def transformer_embedding(token_ids, emb_table, pos_table_full, *,
                          drop_prob=0.1, training=False, seed=0,
                          tile_rows=None, out_dtype=None):
    """token_ids: (B, S) int32.  Returns (B, S, d_model)."""
    B, S = token_ids.shape
    V, D = emb_table.shape
    assert S <= pos_table_full.shape[0]
    if out_dtype is None:
        out_dtype = emb_table.dtype

    emb_itemsize = jnp.dtype(emb_table.dtype).itemsize
    out_itemsize = jnp.dtype(out_dtype).itemsize

    if tile_rows is None:
        tile_rows = _pick_tile_rows(S, D, emb_itemsize)
    assert S % tile_rows == 0, "tile_rows must divide seq_len"
    assert tile_rows == S or tile_rows % 8 == 0, "sublane alignment"
    n_tiles = S // tile_rows

    pos_table = pos_table_full[:S, :].astype(jnp.float32)   # PositionalEncoding.forward
    ids_flat = token_ids.astype(jnp.int32).reshape(B * S)
    seed_arr = jnp.array([seed], dtype=jnp.int32)

    kernel = functools.partial(
        _embedding_kernel,
        seq_len=S, tile_rows=tile_rows, d_model=D,
        drop_prob=float(drop_prob), training=bool(training))

    grid_spec = pltpu.PrefetchScalarGridSpec(
        num_scalar_prefetch=2,                 # ids, seed -> SMEM
        grid=(n_tiles, B),                     # seq tiles outer, batch inner
        in_specs=[
            pl.BlockSpec(memory_space=pl.ANY),                     # emb table in HBM
            pl.BlockSpec((tile_rows, D),
                         lambda st, b, ids, seed: (st, 0)),        # pos: resident in b
        ],
        out_specs=pl.BlockSpec((1, tile_rows, D),
                               lambda st, b, ids, seed: (b, st, 0)),
        scratch_shapes=[
            pltpu.VMEM((2, tile_rows, D), emb_table.dtype),  # double-buffered gather
            pltpu.SemaphoreType.DMA((2,)),                   # per-slot DMA semaphores
        ],
    )

    # Explicit VMEM budget guard (only raise the scoped limit when needed).
    est_live = tile_rows * D * (2 * emb_itemsize + 2 * 4 + 2 * out_itemsize)
    vmem_limit = None
    if 2 * est_live > (16 << 20):
        vmem_limit = min(2 * est_live, 48 << 20)   # keep headroom on v7x (64 MiB)

    return pl.pallas_call(
        kernel,
        out_shape=jax.ShapeDtypeStruct((B, S, D), out_dtype),
        grid_spec=grid_spec,
        compiler_params=pltpu.CompilerParams(
            dimension_semantics=("parallel", "arbitrary"),
            vmem_limit_bytes=vmem_limit),
    )(ids_flat, seed_arr, emb_table, pos_table)


if __name__ == "__main__":
    # Small shapes consistent with the module's forward: x is (batch, seq) of
    # token ids; d_model on lanes.
    vocab_size = 256
    d_model = 128
    max_len = 64
    batch, seq = 4, 32
    drop_prob = 0.1
    tile_rows = 16    # 2 seq tiles x 4 batch steps -> exercises pos residency
                      # and the cross-batch double-buffered gather

    key = jax.random.PRNGKey(0)
    k_emb, k_ids = jax.random.split(key)

    emb_table = init_token_embedding(k_emb, vocab_size, d_model, padding_idx=1)
    pos_table = make_positional_encoding(d_model, max_len)
    token_ids = jax.random.randint(k_ids, (batch, seq), 0, vocab_size,
                                   dtype=jnp.int32)

    ref = emb_table[token_ids] + pos_table[:seq][None, :, :]

    # Eval mode (dropout = identity): exact check against a pure-JAX reference.
    out_eval = transformer_embedding(token_ids, emb_table, pos_table,
                                     drop_prob=drop_prob, training=False,
                                     tile_rows=tile_rows)
    out_eval = jax.block_until_ready(out_eval)
    assert out_eval.shape == (batch, seq, d_model)
    assert jnp.allclose(out_eval, ref, atol=1e-5, rtol=1e-5)

    # Default (budget-driven) tile picking path.
    out_auto = transformer_embedding(token_ids, emb_table, pos_table,
                                     drop_prob=drop_prob, training=False)
    out_auto = jax.block_until_ready(out_auto)
    assert jnp.allclose(out_auto, ref, atol=1e-5, rtol=1e-5)

    # bf16 output path (halves writeback bytes).
    out_bf16 = transformer_embedding(token_ids, emb_table, pos_table,
                                     drop_prob=drop_prob, training=False,
                                     tile_rows=tile_rows, out_dtype=jnp.bfloat16)
    out_bf16 = jax.block_until_ready(out_bf16)
    assert jnp.allclose(out_bf16.astype(jnp.float32), ref, atol=5e-2, rtol=5e-2)

    # Training mode: every element must be 0 or ref/(1-p); keep rate ~ 1-p.
    out_train = transformer_embedding(token_ids, emb_table, pos_table,
                                      drop_prob=drop_prob, training=True,
                                      seed=1234, tile_rows=tile_rows)
    out_train = jax.block_until_ready(out_train)
    assert out_train.shape == (batch, seq, d_model)
    scale = 1.0 / (1.0 - drop_prob)
    is_zero = jnp.isclose(out_train, 0.0, atol=1e-6)
    is_kept = jnp.isclose(out_train, ref * scale, atol=1e-4, rtol=1e-4)
    assert bool(jnp.all(is_zero | is_kept))
    keep_frac = float(jnp.mean(is_kept.astype(jnp.float32)))
    assert 0.8 < keep_frac < 0.97, keep_frac

    print("KERNEL_OK")
</pallas_src>

<mosaic_0001>
module attributes {stable_mosaic.version = 11 : i64} {
  func.func @_embedding_kernel(%arg0: i32, %arg1: i32, %arg2: memref<128xi32, #tpu.memory_space<smem>>, %arg3: memref<1xi32, #tpu.memory_space<smem>>, %arg4: memref<256x128xf32, #tpu.memory_space<any>>, %arg5: memref<16x128xf32, #tpu.memory_space<vmem>>, %arg6: memref<1x16x128xf32, #tpu.memory_space<vmem>>, %arg7: memref<2x16x128xf32, #tpu.memory_space<vmem>>, %arg8: memref<2x!tpu.dma_semaphore, #tpu.memory_space<semaphore_mem>>) attributes {dimension_semantics = [#tpu.dimension_semantics<parallel>, #tpu.dimension_semantics<arbitrary>], iteration_bounds = array<i64: 2, 4>, scalar_prefetch = 2 : i64, scratch_operands = 2 : i64, tpu.core_type = #tpu.core_type<tc>, window_params = [{}, {transform_indices = @transform_1, window_bounds = array<i64: 16, 128>}, {transform_indices = @transform_2, window_bounds = array<i64: 1, 16, 128>}]} {
    %c32_i32 = arith.constant 32 : i32
    %0 = arith.muli %arg1, %c32_i32 : i32
    %c16_i32 = arith.constant 16 : i32
    %1 = arith.muli %arg0, %c16_i32 : i32
    %2 = arith.addi %0, %1 : i32
    %c2_i32 = arith.constant 2 : i32
    %3 = arith.remsi %arg1, %c2_i32 : i32
    %c0_i32 = arith.constant 0 : i32
    %4 = arith.cmpi eq, %arg1, %c0_i32 : i32
    %5 = arith.extui %4 : i1 to i32
    %c0_i32_0 = arith.constant 0 : i32
    %6 = arith.cmpi ne, %5, %c0_i32_0 : i32
    scf.if %6 {
      %c0_i32_60 = arith.constant 0 : i32
      %99 = arith.addi %2, %c0_i32_60 : i32
      %100 = arith.index_cast %99 : i32 to index
      %101 = memref.load %arg2[%100] : memref<128xi32, #tpu.memory_space<smem>>
      %c0_i32_61 = arith.constant 0 : i32
      %102 = tpu.memref_slice %arg4[%101, %c0_i32_61] : memref<256x128xf32, #tpu.memory_space<any>> -> memref<1x128xf32, #tpu.memory_space<any>>
      %c0_i32_62 = arith.constant 0 : i32
      %c0_i32_63 = arith.constant 0 : i32
      %103 = tpu.memref_slice %arg7[%3, %c0_i32_62, %c0_i32_63] : memref<2x16x128xf32, #tpu.memory_space<vmem>> -> memref<1x1x128xf32, #tpu.memory_space<vmem>>
      %104 = tpu.memref_squeeze %103 : memref<1x1x128xf32, #tpu.memory_space<vmem>> -> memref<1x128xf32, #tpu.memory_space<vmem>>
      %105 = tpu.memref_slice %arg8[%3] : memref<2x!tpu.dma_semaphore, #tpu.memory_space<semaphore_mem>> -> memref<1x!tpu.dma_semaphore, #tpu.memory_space<semaphore_mem>>
      %106 = tpu.memref_squeeze %105 : memref<1x!tpu.dma_semaphore, #tpu.memory_space<semaphore_mem>> -> memref<!tpu.dma_semaphore, #tpu.memory_space<semaphore_mem>>
      tpu.enqueue_dma source(%102 : memref<1x128xf32, #tpu.memory_space<any>>) target(%104 : memref<1x128xf32, #tpu.memory_space<vmem>>) target_semaphore(%106 : memref<!tpu.dma_semaphore, #tpu.memory_space<semaphore_mem>>)
      %c1_i32_64 = arith.constant 1 : i32
      %107 = arith.addi %2, %c1_i32_64 : i32
      %108 = arith.index_cast %107 : i32 to index
      %109 = memref.load %arg2[%108] : memref<128xi32, #tpu.memory_space<smem>>
      %c0_i32_65 = arith.constant 0 : i32
      %110 = tpu.memref_slice %arg4[%109, %c0_i32_65] : memref<256x128xf32, #tpu.memory_space<any>> -> memref<1x128xf32, #tpu.memory_space<any>>
      %c1_i32_66 = arith.constant 1 : i32
      %c0_i32_67 = arith.constant 0 : i32
      %111 = tpu.memref_slice %arg7[%3, %c1_i32_66, %c0_i32_67] : memref<2x16x128xf32, #tpu.memory_space<vmem>> -> memref<1x1x128xf32, #tpu.memory_space<vmem>>
      %112 = tpu.memref_squeeze %111 : memref<1x1x128xf32, #tpu.memory_space<vmem>> -> memref<1x128xf32, #tpu.memory_space<vmem>>
      %113 = tpu.memref_slice %arg8[%3] : memref<2x!tpu.dma_semaphore, #tpu.memory_space<semaphore_mem>> -> memref<1x!tpu.dma_semaphore, #tpu.memory_space<semaphore_mem>>
      %114 = tpu.memref_squeeze %113 : memref<1x!tpu.dma_semaphore, #tpu.memory_space<semaphore_mem>> -> memref<!tpu.dma_semaphore, #tpu.memory_space<semaphore_mem>>
      tpu.enqueue_dma source(%110 : memref<1x128xf32, #tpu.memory_space<any>>) target(%112 : memref<1x128xf32, #tpu.memory_space<vmem>>) target_semaphore(%114 : memref<!tpu.dma_semaphore, #tpu.memory_space<semaphore_mem>>)
      %c2_i32_68 = arith.constant 2 : i32
      %115 = arith.addi %2, %c2_i32_68 : i32
      %116 = arith.index_cast %115 : i32 to index
      %117 = memref.load %arg2[%116] : memref<128xi32, #tpu.memory_space<smem>>
      %c0_i32_69 = arith.constant 0 : i32
      %118 = tpu.memref_slice %arg4[%117, %c0_i32_69] : memref<256x128xf32, #tpu.memory_space<any>> -> memref<1x128xf32, #tpu.memory_space<any>>
      %c2_i32_70 = arith.constant 2 : i32
      %c0_i32_71 = arith.constant 0 : i32
      %119 = tpu.memref_slice %arg7[%3, %c2_i32_70, %c0_i32_71] : memref<2x16x128xf32, #tpu.memory_space<vmem>> -> memref<1x1x128xf32, #tpu.memory_space<vmem>>
      %120 = tpu.memref_squeeze %119 : memref<1x1x128xf32, #tpu.memory_space<vmem>> -> memref<1x128xf32, #tpu.memory_space<vmem>>
      %121 = tpu.memref_slice %arg8[%3] : memref<2x!tpu.dma_semaphore, #tpu.memory_space<semaphore_mem>> -> memref<1x!tpu.dma_semaphore, #tpu.memory_space<semaphore_mem>>
      %122 = tpu.memref_squeeze %121 : memref<1x!tpu.dma_semaphore, #tpu.memory_space<semaphore_mem>> -> memref<!tpu.dma_semaphore, #tpu.memory_space<semaphore_mem>>
      tpu.enqueue_dma source(%118 : memref<1x128xf32, #tpu.memory_space<any>>) target(%120 : memref<1x128xf32, #tpu.memory_space<vmem>>) target_semaphore(%122 : memref<!tpu.dma_semaphore, #tpu.memory_space<semaphore_mem>>)
      %c3_i32_72 = arith.constant 3 : i32
      %123 = arith.addi %2, %c3_i32_72 : i32
      %124 = arith.index_cast %123 : i32 to index
      %125 = memref.load %arg2[%124] : memref<128xi32, #tpu.memory_space<smem>>
      %c0_i32_73 = arith.constant 0 : i32
      %126 = tpu.memref_slice %arg4[%125, %c0_i32_73] : memref<256x128xf32, #tpu.memory_space<any>> -> memref<1x128xf32, #tpu.memory_space<any>>
      %c3_i32_74 = arith.constant 3 : i32
      %c0_i32_75 = arith.constant 0 : i32
      %127 = tpu.memref_slice %arg7[%3, %c3_i32_74, %c0_i32_75] : memref<2x16x128xf32, #tpu.memory_space<vmem>> -> memref<1x1x128xf32, #tpu.memory_space<vmem>>
      %128 = tpu.memref_squeeze %127 : memref<1x1x128xf32, #tpu.memory_space<vmem>> -> memref<1x128xf32, #tpu.memory_space<vmem>>
      %129 = tpu.memref_slice %arg8[%3] : memref<2x!tpu.dma_semaphore, #tpu.memory_space<semaphore_mem>> -> memref<1x!tpu.dma_semaphore, #tpu.memory_space<semaphore_mem>>
      %130 = tpu.memref_squeeze %129 : memref<1x!tpu.dma_semaphore, #tpu.memory_space<semaphore_mem>> -> memref<!tpu.dma_semaphore, #tpu.memory_space<semaphore_mem>>
      tpu.enqueue_dma source(%126 : memref<1x128xf32, #tpu.memory_space<any>>) target(%128 : memref<1x128xf32, #tpu.memory_space<vmem>>) target_semaphore(%130 : memref<!tpu.dma_semaphore, #tpu.memory_space<semaphore_mem>>)
      %c4_i32_76 = arith.constant 4 : i32
      %131 = arith.addi %2, %c4_i32_76 : i32
      %132 = arith.index_cast %131 : i32 to index
      %133 = memref.load %arg2[%132] : memref<128xi32, #tpu.memory_space<smem>>
      %c0_i32_77 = arith.constant 0 : i32
      %134 = tpu.memref_slice %arg4[%133, %c0_i32_77] : memref<256x128xf32, #tpu.memory_space<any>> -> memref<1x128xf32, #tpu.memory_space<any>>
      %c4_i32_78 = arith.constant 4 : i32
      %c0_i32_79 = arith.constant 0 : i32
      %135 = tpu.memref_slice %arg7[%3, %c4_i32_78, %c0_i32_79] : memref<2x16x128xf32, #tpu.memory_space<vmem>> -> memref<1x1x128xf32, #tpu.memory_space<vmem>>
      %136 = tpu.memref_squeeze %135 : memref<1x1x128xf32, #tpu.memory_space<vmem>> -> memref<1x128xf32, #tpu.memory_space<vmem>>
      %137 = tpu.memref_slice %arg8[%3] : memref<2x!tpu.dma_semaphore, #tpu.memory_space<semaphore_mem>> -> memref<1x!tpu.dma_semaphore, #tpu.memory_space<semaphore_mem>>
      %138 = tpu.memref_squeeze %137 : memref<1x!tpu.dma_semaphore, #tpu.memory_space<semaphore_mem>> -> memref<!tpu.dma_semaphore, #tpu.memory_space<semaphore_mem>>
      tpu.enqueue_dma source(%134 : memref<1x128xf32, #tpu.memory_space<any>>) target(%136 : memref<1x128xf32, #tpu.memory_space<vmem>>) target_semaphore(%138 : memref<!tpu.dma_semaphore, #tpu.memory_space<semaphore_mem>>)
      %c5_i32_80 = arith.constant 5 : i32
      %139 = arith.addi %2, %c5_i32_80 : i32
      %140 = arith.index_cast %139 : i32 to index
      %141 = memref.load %arg2[%140] : memref<128xi32, #tpu.memory_space<smem>>
      %c0_i32_81 = arith.constant 0 : i32
      %142 = tpu.memref_slice %arg4[%141, %c0_i32_81] : memref<256x128xf32, #tpu.memory_space<any>> -> memref<1x128xf32, #tpu.memory_space<any>>
      %c5_i32_82 = arith.constant 5 : i32
      %c0_i32_83 = arith.constant 0 : i32
      %143 = tpu.memref_slice %arg7[%3, %c5_i32_82, %c0_i32_83] : memref<2x16x128xf32, #tpu.memory_space<vmem>> -> memref<1x1x128xf32, #tpu.memory_space<vmem>>
      %144 = tpu.memref_squeeze %143 : memref<1x1x128xf32, #tpu.memory_space<vmem>> -> memref<1x128xf32, #tpu.memory_space<vmem>>
      %145 = tpu.memref_slice %arg8[%3] : memref<2x!tpu.dma_semaphore, #tpu.memory_space<semaphore_mem>> -> memref<1x!tpu.dma_semaphore, #tpu.memory_space<semaphore_mem>>
      %146 = tpu.memref_squeeze %145 : memref<1x!tpu.dma_semaphore, #tpu.memory_space<semaphore_mem>> -> memref<!tpu.dma_semaphore, #tpu.memory_space<semaphore_mem>>
      tpu.enqueue_dma source(%142 : memref<1x128xf32, #tpu.memory_space<any>>) target(%144 : memref<1x128xf32, #tpu.memory_space<vmem>>) target_semaphore(%146 : memref<!tpu.dma_semaphore, #tpu.memory_space<semaphore_mem>>)
      %c6_i32_84 = arith.constant 6 : i32
      %147 = arith.addi %2, %c6_i32_84 : i32
      %148 = arith.index_cast %147 : i32 to index
      %149 = memref.load %arg2[%148] : memref<128xi32, #tpu.memory_space<smem>>
      %c0_i32_85 = arith.constant 0 : i32
      %150 = tpu.memref_slice %arg4[%149, %c0_i32_85] : memref<256x128xf32, #tpu.memory_space<any>> -> memref<1x128xf32, #tpu.memory_space<any>>
      %c6_i32_86 = arith.constant 6 : i32
      %c0_i32_87 = arith.constant 0 : i32
      %151 = tpu.memref_slice %arg7[%3, %c6_i32_86, %c0_i32_87] : memref<2x16x128xf32, #tpu.memory_space<vmem>> -> memref<1x1x128xf32, #tpu.memory_space<vmem>>
      %152 = tpu.memref_squeeze %151 : memref<1x1x128xf32, #tpu.memory_space<vmem>> -> memref<1x128xf32, #tpu.memory_space<vmem>>
      %153 = tpu.memref_slice %arg8[%3] : memref<2x!tpu.dma_semaphore, #tpu.memory_space<semaphore_mem>> -> memref<1x!tpu.dma_semaphore, #tpu.memory_space<semaphore_mem>>
      %154 = tpu.memref_squeeze %153 : memref<1x!tpu.dma_semaphore, #tpu.memory_space<semaphore_mem>> -> memref<!tpu.dma_semaphore, #tpu.memory_space<semaphore_mem>>
      tpu.enqueue_dma source(%150 : memref<1x128xf32, #tpu.memory_space<any>>) target(%152 : memref<1x128xf32, #tpu.memory_space<vmem>>) target_semaphore(%154 : memref<!tpu.dma_semaphore, #tpu.memory_space<semaphore_mem>>)
      %c7_i32_88 = arith.constant 7 : i32
      %155 = arith.addi %2, %c7_i32_88 : i32
      %156 = arith.index_cast %155 : i32 to index
      %157 = memref.load %arg2[%156] : memref<128xi32, #tpu.memory_space<smem>>
      %c0_i32_89 = arith.constant 0 : i32
      %158 = tpu.memref_slice %arg4[%157, %c0_i32_89] : memref<256x128xf32, #tpu.memory_space<any>> -> memref<1x128xf32, #tpu.memory_space<any>>
      %c7_i32_90 = arith.constant 7 : i32
      %c0_i32_91 = arith.constant 0 : i32
      %159 = tpu.memref_slice %arg7[%3, %c7_i32_90, %c0_i32_91] : memref<2x16x128xf32, #tpu.memory_space<vmem>> -> memref<1x1x128xf32, #tpu.memory_space<vmem>>
      %160 = tpu.memref_squeeze %159 : memref<1x1x128xf32, #tpu.memory_space<vmem>> -> memref<1x128xf32, #tpu.memory_space<vmem>>
      %161 = tpu.memref_slice %arg8[%3] : memref<2x!tpu.dma_semaphore, #tpu.memory_space<semaphore_mem>> -> memref<1x!tpu.dma_semaphore, #tpu.memory_space<semaphore_mem>>
      %162 = tpu.memref_squeeze %161 : memref<1x!tpu.dma_semaphore, #tpu.memory_space<semaphore_mem>> -> memref<!tpu.dma_semaphore, #tpu.memory_space<semaphore_mem>>
      tpu.enqueue_dma source(%158 : memref<1x128xf32, #tpu.memory_space<any>>) target(%160 : memref<1x128xf32, #tpu.memory_space<vmem>>) target_semaphore(%162 : memref<!tpu.dma_semaphore, #tpu.memory_space<semaphore_mem>>)
      %c8_i32_92 = arith.constant 8 : i32
      %163 = arith.addi %2, %c8_i32_92 : i32
      %164 = arith.index_cast %163 : i32 to index
      %165 = memref.load %arg2[%164] : memref<128xi32, #tpu.memory_space<smem>>
      %c0_i32_93 = arith.constant 0 : i32
      %166 = tpu.memref_slice %arg4[%165, %c0_i32_93] : memref<256x128xf32, #tpu.memory_space<any>> -> memref<1x128xf32, #tpu.memory_space<any>>
      %c8_i32_94 = arith.constant 8 : i32
      %c0_i32_95 = arith.constant 0 : i32
      %167 = tpu.memref_slice %arg7[%3, %c8_i32_94, %c0_i32_95] : memref<2x16x128xf32, #tpu.memory_space<vmem>> -> memref<1x1x128xf32, #tpu.memory_space<vmem>>
      %168 = tpu.memref_squeeze %167 : memref<1x1x128xf32, #tpu.memory_space<vmem>> -> memref<1x128xf32, #tpu.memory_space<vmem>>
      %169 = tpu.memref_slice %arg8[%3] : memref<2x!tpu.dma_semaphore, #tpu.memory_space<semaphore_mem>> -> memref<1x!tpu.dma_semaphore, #tpu.memory_space<semaphore_mem>>
      %170 = tpu.memref_squeeze %169 : memref<1x!tpu.dma_semaphore, #tpu.memory_space<semaphore_mem>> -> memref<!tpu.dma_semaphore, #tpu.memory_space<semaphore_mem>>
      tpu.enqueue_dma source(%166 : memref<1x128xf32, #tpu.memory_space<any>>) target(%168 : memref<1x128xf32, #tpu.memory_space<vmem>>) target_semaphore(%170 : memref<!tpu.dma_semaphore, #tpu.memory_space<semaphore_mem>>)
      %c9_i32_96 = arith.constant 9 : i32
      %171 = arith.addi %2, %c9_i32_96 : i32
      %172 = arith.index_cast %171 : i32 to index
      %173 = memref.load %arg2[%172] : memref<128xi32, #tpu.memory_space<smem>>
      %c0_i32_97 = arith.constant 0 : i32
      %174 = tpu.memref_slice %arg4[%173, %c0_i32_97] : memref<256x128xf32, #tpu.memory_space<any>> -> memref<1x128xf32, #tpu.memory_space<any>>
      %c9_i32_98 = arith.constant 9 : i32
      %c0_i32_99 = arith.constant 0 : i32
      %175 = tpu.memref_slice %arg7[%3, %c9_i32_98, %c0_i32_99] : memref<2x16x128xf32, #tpu.memory_space<vmem>> -> memref<1x1x128xf32, #tpu.memory_space<vmem>>
      %176 = tpu.memref_squeeze %175 : memref<1x1x128xf32, #tpu.memory_space<vmem>> -> memref<1x128xf32, #tpu.memory_space<vmem>>
      %177 = tpu.memref_slice %arg8[%3] : memref<2x!tpu.dma_semaphore, #tpu.memory_space<semaphore_mem>> -> memref<1x!tpu.dma_semaphore, #tpu.memory_space<semaphore_mem>>
      %178 = tpu.memref_squeeze %177 : memref<1x!tpu.dma_semaphore, #tpu.memory_space<semaphore_mem>> -> memref<!tpu.dma_semaphore, #tpu.memory_space<semaphore_mem>>
      tpu.enqueue_dma source(%174 : memref<1x128xf32, #tpu.memory_space<any>>) target(%176 : memref<1x128xf32, #tpu.memory_space<vmem>>) target_semaphore(%178 : memref<!tpu.dma_semaphore, #tpu.memory_space<semaphore_mem>>)
      %c10_i32_100 = arith.constant 10 : i32
      %179 = arith.addi %2, %c10_i32_100 : i32
      %180 = arith.index_cast %179 : i32 to index
      %181 = memref.load %arg2[%180] : memref<128xi32, #tpu.memory_space<smem>>
      %c0_i32_101 = arith.constant 0 : i32
      %182 = tpu.memref_slice %arg4[%181, %c0_i32_101] : memref<256x128xf32, #tpu.memory_space<any>> -> memref<1x128xf32, #tpu.memory_space<any>>
      %c10_i32_102 = arith.constant 10 : i32
      %c0_i32_103 = arith.constant 0 : i32
      %183 = tpu.memref_slice %arg7[%3, %c10_i32_102, %c0_i32_103] : memref<2x16x128xf32, #tpu.memory_space<vmem>> -> memref<1x1x128xf32, #tpu.memory_space<vmem>>
      %184 = tpu.memref_squeeze %183 : memref<1x1x128xf32, #tpu.memory_space<vmem>> -> memref<1x128xf32, #tpu.memory_space<vmem>>
      %185 = tpu.memref_slice %arg8[%3] : memref<2x!tpu.dma_semaphore, #tpu.memory_space<semaphore_mem>> -> memref<1x!tpu.dma_semaphore, #tpu.memory_space<semaphore_mem>>
      %186 = tpu.memref_squeeze %185 : memref<1x!tpu.dma_semaphore, #tpu.memory_space<semaphore_mem>> -> memref<!tpu.dma_semaphore, #tpu.memory_space<semaphore_mem>>
      tpu.enqueue_dma source(%182 : memref<1x128xf32, #tpu.memory_space<any>>) target(%184 : memref<1x128xf32, #tpu.memory_space<vmem>>) target_semaphore(%186 : memref<!tpu.dma_semaphore, #tpu.memory_space<semaphore_mem>>)
      %c11_i32_104 = arith.constant 11 : i32
      %187 = arith.addi %2, %c11_i32_104 : i32
      %188 = arith.index_cast %187 : i32 to index
      %189 = memref.load %arg2[%188] : memref<128xi32, #tpu.memory_space<smem>>
      %c0_i32_105 = arith.constant 0 : i32
      %190 = tpu.memref_slice %arg4[%189, %c0_i32_105] : memref<256x128xf32, #tpu.memory_space<any>> -> memref<1x128xf32, #tpu.memory_space<any>>
      %c11_i32_106 = arith.constant 11 : i32
      %c0_i32_107 = arith.constant 0 : i32
      %191 = tpu.memref_slice %arg7[%3, %c11_i32_106, %c0_i32_107] : memref<2x16x128xf32, #tpu.memory_space<vmem>> -> memref<1x1x128xf32, #tpu.memory_space<vmem>>
      %192 = tpu.memref_squeeze %191 : memref<1x1x128xf32, #tpu.memory_space<vmem>> -> memref<1x128xf32, #tpu.memory_space<vmem>>
      %193 = tpu.memref_slice %arg8[%3] : memref<2x!tpu.dma_semaphore, #tpu.memory_space<semaphore_mem>> -> memref<1x!tpu.dma_semaphore, #tpu.memory_space<semaphore_mem>>
      %194 = tpu.memref_squeeze %193 : memref<1x!tpu.dma_semaphore, #tpu.memory_space<semaphore_mem>> -> memref<!tpu.dma_semaphore, #tpu.memory_space<semaphore_mem>>
      tpu.enqueue_dma source(%190 : memref<1x128xf32, #tpu.memory_space<any>>) target(%192 : memref<1x128xf32, #tpu.memory_space<vmem>>) target_semaphore(%194 : memref<!tpu.dma_semaphore, #tpu.memory_space<semaphore_mem>>)
      %c12_i32_108 = arith.constant 12 : i32
      %195 = arith.addi %2, %c12_i32_108 : i32
      %196 = arith.index_cast %195 : i32 to index
      %197 = memref.load %arg2[%196] : memref<128xi32, #tpu.memory_space<smem>>
      %c0_i32_109 = arith.constant 0 : i32
      %198 = tpu.memref_slice %arg4[%197, %c0_i32_109] : memref<256x128xf32, #tpu.memory_space<any>> -> memref<1x128xf32, #tpu.memory_space<any>>
      %c12_i32_110 = arith.constant 12 : i32
      %c0_i32_111 = arith.constant 0 : i32
      %199 = tpu.memref_slice %arg7[%3, %c12_i32_110, %c0_i32_111] : memref<2x16x128xf32, #tpu.memory_space<vmem>> -> memref<1x1x128xf32, #tpu.memory_space<vmem>>
      %200 = tpu.memref_squeeze %199 : memref<1x1x128xf32, #tpu.memory_space<vmem>> -> memref<1x128xf32, #tpu.memory_space<vmem>>
      %201 = tpu.memref_slice %arg8[%3] : memref<2x!tpu.dma_semaphore, #tpu.memory_space<semaphore_mem>> -> memref<1x!tpu.dma_semaphore, #tpu.memory_space<semaphore_mem>>
      %202 = tpu.memref_squeeze %201 : memref<1x!tpu.dma_semaphore, #tpu.memory_space<semaphore_mem>> -> memref<!tpu.dma_semaphore, #tpu.memory_space<semaphore_mem>>
      tpu.enqueue_dma source(%198 : memref<1x128xf32, #tpu.memory_space<any>>) target(%200 : memref<1x128xf32, #tpu.memory_space<vmem>>) target_semaphore(%202 : memref<!tpu.dma_semaphore, #tpu.memory_space<semaphore_mem>>)
      %c13_i32_112 = arith.constant 13 : i32
      %203 = arith.addi %2, %c13_i32_112 : i32
      %204 = arith.index_cast %203 : i32 to index
      %205 = memref.load %arg2[%204] : memref<128xi32, #tpu.memory_space<smem>>
      %c0_i32_113 = arith.constant 0 : i32
      %206 = tpu.memref_slice %arg4[%205, %c0_i32_113] : memref<256x128xf32, #tpu.memory_space<any>> -> memref<1x128xf32, #tpu.memory_space<any>>
      %c13_i32_114 = arith.constant 13 : i32
      %c0_i32_115 = arith.constant 0 : i32
      %207 = tpu.memref_slice %arg7[%3, %c13_i32_114, %c0_i32_115] : memref<2x16x128xf32, #tpu.memory_space<vmem>> -> memref<1x1x128xf32, #tpu.memory_space<vmem>>
      %208 = tpu.memref_squeeze %207 : memref<1x1x128xf32, #tpu.memory_space<vmem>> -> memref<1x128xf32, #tpu.memory_space<vmem>>
      %209 = tpu.memref_slice %arg8[%3] : memref<2x!tpu.dma_semaphore, #tpu.memory_space<semaphore_mem>> -> memref<1x!tpu.dma_semaphore, #tpu.memory_space<semaphore_mem>>
      %210 = tpu.memref_squeeze %209 : memref<1x!tpu.dma_semaphore, #tpu.memory_space<semaphore_mem>> -> memref<!tpu.dma_semaphore, #tpu.memory_space<semaphore_mem>>
      tpu.enqueue_dma source(%206 : memref<1x128xf32, #tpu.memory_space<any>>) target(%208 : memref<1x128xf32, #tpu.memory_space<vmem>>) target_semaphore(%210 : memref<!tpu.dma_semaphore, #tpu.memory_space<semaphore_mem>>)
      %c14_i32_116 = arith.constant 14 : i32
      %211 = arith.addi %2, %c14_i32_116 : i32
      %212 = arith.index_cast %211 : i32 to index
      %213 = memref.load %arg2[%212] : memref<128xi32, #tpu.memory_space<smem>>
      %c0_i32_117 = arith.constant 0 : i32
      %214 = tpu.memref_slice %arg4[%213, %c0_i32_117] : memref<256x128xf32, #tpu.memory_space<any>> -> memref<1x128xf32, #tpu.memory_space<any>>
      %c14_i32_118 = arith.constant 14 : i32
      %c0_i32_119 = arith.constant 0 : i32
      %215 = tpu.memref_slice %arg7[%3, %c14_i32_118, %c0_i32_119] : memref<2x16x128xf32, #tpu.memory_space<vmem>> -> memref<1x1x128xf32, #tpu.memory_space<vmem>>
      %216 = tpu.memref_squeeze %215 : memref<1x1x128xf32, #tpu.memory_space<vmem>> -> memref<1x128xf32, #tpu.memory_space<vmem>>
      %217 = tpu.memref_slice %arg8[%3] : memref<2x!tpu.dma_semaphore, #tpu.memory_space<semaphore_mem>> -> memref<1x!tpu.dma_semaphore, #tpu.memory_space<semaphore_mem>>
      %218 = tpu.memref_squeeze %217 : memref<1x!tpu.dma_semaphore, #tpu.memory_space<semaphore_mem>> -> memref<!tpu.dma_semaphore, #tpu.memory_space<semaphore_mem>>
      tpu.enqueue_dma source(%214 : memref<1x128xf32, #tpu.memory_space<any>>) target(%216 : memref<1x128xf32, #tpu.memory_space<vmem>>) target_semaphore(%218 : memref<!tpu.dma_semaphore, #tpu.memory_space<semaphore_mem>>)
      %c15_i32_120 = arith.constant 15 : i32
      %219 = arith.addi %2, %c15_i32_120 : i32
      %220 = arith.index_cast %219 : i32 to index
      %221 = memref.load %arg2[%220] : memref<128xi32, #tpu.memory_space<smem>>
      %c0_i32_121 = arith.constant 0 : i32
      %222 = tpu.memref_slice %arg4[%221, %c0_i32_121] : memref<256x128xf32, #tpu.memory_space<any>> -> memref<1x128xf32, #tpu.memory_space<any>>
      %c15_i32_122 = arith.constant 15 : i32
      %c0_i32_123 = arith.constant 0 : i32
      %223 = tpu.memref_slice %arg7[%3, %c15_i32_122, %c0_i32_123] : memref<2x16x128xf32, #tpu.memory_space<vmem>> -> memref<1x1x128xf32, #tpu.memory_space<vmem>>
      %224 = tpu.memref_squeeze %223 : memref<1x1x128xf32, #tpu.memory_space<vmem>> -> memref<1x128xf32, #tpu.memory_space<vmem>>
      %225 = tpu.memref_slice %arg8[%3] : memref<2x!tpu.dma_semaphore, #tpu.memory_space<semaphore_mem>> -> memref<1x!tpu.dma_semaphore, #tpu.memory_space<semaphore_mem>>
      %226 = tpu.memref_squeeze %225 : memref<1x!tpu.dma_semaphore, #tpu.memory_space<semaphore_mem>> -> memref<!tpu.dma_semaphore, #tpu.memory_space<semaphore_mem>>
      tpu.enqueue_dma source(%222 : memref<1x128xf32, #tpu.memory_space<any>>) target(%224 : memref<1x128xf32, #tpu.memory_space<vmem>>) target_semaphore(%226 : memref<!tpu.dma_semaphore, #tpu.memory_space<semaphore_mem>>)
    } else {
    }
    %c1_i32 = arith.constant 1 : i32
    %7 = arith.addi %arg1, %c1_i32 : i32
    %c4_i32 = arith.constant 4 : i32
    %8 = arith.cmpi slt, %7, %c4_i32 : i32
    %9 = arith.extui %8 : i1 to i32
    %c0_i32_1 = arith.constant 0 : i32
    %10 = arith.cmpi ne, %9, %c0_i32_1 : i32
    scf.if %10 {
      %c32_i32_60 = arith.constant 32 : i32
      %99 = arith.addi %2, %c32_i32_60 : i32
      %c1_i32_61 = arith.constant 1 : i32
      %100 = arith.subi %c1_i32_61, %3 : i32
      %c0_i32_62 = arith.constant 0 : i32
      %101 = arith.addi %99, %c0_i32_62 : i32
      %102 = arith.index_cast %101 : i32 to index
      %103 = memref.load %arg2[%102] : memref<128xi32, #tpu.memory_space<smem>>
      %c0_i32_63 = arith.constant 0 : i32
      %104 = tpu.memref_slice %arg4[%103, %c0_i32_63] : memref<256x128xf32, #tpu.memory_space<any>> -> memref<1x128xf32, #tpu.memory_space<any>>
      %c0_i32_64 = arith.constant 0 : i32
      %c0_i32_65 = arith.constant 0 : i32
      %105 = tpu.memref_slice %arg7[%100, %c0_i32_64, %c0_i32_65] : memref<2x16x128xf32, #tpu.memory_space<vmem>> -> memref<1x1x128xf32, #tpu.memory_space<vmem>>
      %106 = tpu.memref_squeeze %105 : memref<1x1x128xf32, #tpu.memory_space<vmem>> -> memref<1x128xf32, #tpu.memory_space<vmem>>
      %107 = tpu.memref_slice %arg8[%100] : memref<2x!tpu.dma_semaphore, #tpu.memory_space<semaphore_mem>> -> memref<1x!tpu.dma_semaphore, #tpu.memory_space<semaphore_mem>>
      %108 = tpu.memref_squeeze %107 : memref<1x!tpu.dma_semaphore, #tpu.memory_space<semaphore_mem>> -> memref<!tpu.dma_semaphore, #tpu.memory_space<semaphore_mem>>
      tpu.enqueue_dma source(%104 : memref<1x128xf32, #tpu.memory_space<any>>) target(%106 : memref<1x128xf32, #tpu.memory_space<vmem>>) target_semaphore(%108 : memref<!tpu.dma_semaphore, #tpu.memory_space<semaphore_mem>>)
      %c1_i32_66 = arith.constant 1 : i32
      %109 = arith.addi %99, %c1_i32_66 : i32
      %110 = arith.index_cast %109 : i32 to index
      %111 = memref.load %arg2[%110] : memref<128xi32, #tpu.memory_space<smem>>
      %c0_i32_67 = arith.constant 0 : i32
      %112 = tpu.memref_slice %arg4[%111, %c0_i32_67] : memref<256x128xf32, #tpu.memory_space<any>> -> memref<1x128xf32, #tpu.memory_space<any>>
      %c1_i32_68 = arith.constant 1 : i32
      %c0_i32_69 = arith.constant 0 : i32
      %113 = tpu.memref_slice %arg7[%100, %c1_i32_68, %c0_i32_69] : memref<2x16x128xf32, #tpu.memory_space<vmem>> -> memref<1x1x128xf32, #tpu.memory_space<vmem>>
      %114 = tpu.memref_squeeze %113 : memref<1x1x128xf32, #tpu.memory_space<vmem>> -> memref<1x128xf32, #tpu.memory_space<vmem>>
      %115 = tpu.memref_slice %arg8[%100] : memref<2x!tpu.dma_semaphore, #tpu.memory_space<semaphore_mem>> -> memref<1x!tpu.dma_semaphore, #tpu.memory_space<semaphore_mem>>
      %116 = tpu.memref_squeeze %115 : memref<1x!tpu.dma_semaphore, #tpu.memory_space<semaphore_mem>> -> memref<!tpu.dma_semaphore, #tpu.memory_space<semaphore_mem>>
      tpu.enqueue_dma source(%112 : memref<1x128xf32, #tpu.memory_space<any>>) target(%114 : memref<1x128xf32, #tpu.memory_space<vmem>>) target_semaphore(%116 : memref<!tpu.dma_semaphore, #tpu.memory_space<semaphore_mem>>)
      %c2_i32_70 = arith.constant 2 : i32
      %117 = arith.addi %99, %c2_i32_70 : i32
      %118 = arith.index_cast %117 : i32 to index
      %119 = memref.load %arg2[%118] : memref<128xi32, #tpu.memory_space<smem>>
      %c0_i32_71 = arith.constant 0 : i32
      %120 = tpu.memref_slice %arg4[%119, %c0_i32_71] : memref<256x128xf32, #tpu.memory_space<any>> -> memref<1x128xf32, #tpu.memory_space<any>>
      %c2_i32_72 = arith.constant 2 : i32
      %c0_i32_73 = arith.constant 0 : i32
      %121 = tpu.memref_slice %arg7[%100, %c2_i32_72, %c0_i32_73] : memref<2x16x128xf32, #tpu.memory_space<vmem>> -> memref<1x1x128xf32, #tpu.memory_space<vmem>>
      %122 = tpu.memref_squeeze %121 : memref<1x1x128xf32, #tpu.memory_space<vmem>> -> memref<1x128xf32, #tpu.memory_space<vmem>>
      %123 = tpu.memref_slice %arg8[%100] : memref<2x!tpu.dma_semaphore, #tpu.memory_space<semaphore_mem>> -> memref<1x!tpu.dma_semaphore, #tpu.memory_space<semaphore_mem>>
      %124 = tpu.memref_squeeze %123 : memref<1x!tpu.dma_semaphore, #tpu.memory_space<semaphore_mem>> -> memref<!tpu.dma_semaphore, #tpu.memory_space<semaphore_mem>>
      tpu.enqueue_dma source(%120 : memref<1x128xf32, #tpu.memory_space<any>>) target(%122 : memref<1x128xf32, #tpu.memory_space<vmem>>) target_semaphore(%124 : memref<!tpu.dma_semaphore, #tpu.memory_space<semaphore_mem>>)
      %c3_i32_74 = arith.constant 3 : i32
      %125 = arith.addi %99, %c3_i32_74 : i32
      %126 = arith.index_cast %125 : i32 to index
      %127 = memref.load %arg2[%126] : memref<128xi32, #tpu.memory_space<smem>>
      %c0_i32_75 = arith.constant 0 : i32
      %128 = tpu.memref_slice %arg4[%127, %c0_i32_75] : memref<256x128xf32, #tpu.memory_space<any>> -> memref<1x128xf32, #tpu.memory_space<any>>
      %c3_i32_76 = arith.constant 3 : i32
      %c0_i32_77 = arith.constant 0 : i32
      %129 = tpu.memref_slice %arg7[%100, %c3_i32_76, %c0_i32_77] : memref<2x16x128xf32, #tpu.memory_space<vmem>> -> memref<1x1x128xf32, #tpu.memory_space<vmem>>
      %130 = tpu.memref_squeeze %129 : memref<1x1x128xf32, #tpu.memory_space<vmem>> -> memref<1x128xf32, #tpu.memory_space<vmem>>
      %131 = tpu.memref_slice %arg8[%100] : memref<2x!tpu.dma_semaphore, #tpu.memory_space<semaphore_mem>> -> memref<1x!tpu.dma_semaphore, #tpu.memory_space<semaphore_mem>>
      %132 = tpu.memref_squeeze %131 : memref<1x!tpu.dma_semaphore, #tpu.memory_space<semaphore_mem>> -> memref<!tpu.dma_semaphore, #tpu.memory_space<semaphore_mem>>
      tpu.enqueue_dma source(%128 : memref<1x128xf32, #tpu.memory_space<any>>) target(%130 : memref<1x128xf32, #tpu.memory_space<vmem>>) target_semaphore(%132 : memref<!tpu.dma_semaphore, #tpu.memory_space<semaphore_mem>>)
      %c4_i32_78 = arith.constant 4 : i32
      %133 = arith.addi %99, %c4_i32_78 : i32
      %134 = arith.index_cast %133 : i32 to index
      %135 = memref.load %arg2[%134] : memref<128xi32, #tpu.memory_space<smem>>
      %c0_i32_79 = arith.constant 0 : i32
      %136 = tpu.memref_slice %arg4[%135, %c0_i32_79] : memref<256x128xf32, #tpu.memory_space<any>> -> memref<1x128xf32, #tpu.memory_space<any>>
      %c4_i32_80 = arith.constant 4 : i32
      %c0_i32_81 = arith.constant 0 : i32
      %137 = tpu.memref_slice %arg7[%100, %c4_i32_80, %c0_i32_81] : memref<2x16x128xf32, #tpu.memory_space<vmem>> -> memref<1x1x128xf32, #tpu.memory_space<vmem>>
      %138 = tpu.memref_squeeze %137 : memref<1x1x128xf32, #tpu.memory_space<vmem>> -> memref<1x128xf32, #tpu.memory_space<vmem>>
      %139 = tpu.memref_slice %arg8[%100] : memref<2x!tpu.dma_semaphore, #tpu.memory_space<semaphore_mem>> -> memref<1x!tpu.dma_semaphore, #tpu.memory_space<semaphore_mem>>
      %140 = tpu.memref_squeeze %139 : memref<1x!tpu.dma_semaphore, #tpu.memory_space<semaphore_mem>> -> memref<!tpu.dma_semaphore, #tpu.memory_space<semaphore_mem>>
      tpu.enqueue_dma source(%136 : memref<1x128xf32, #tpu.memory_space<any>>) target(%138 : memref<1x128xf32, #tpu.memory_space<vmem>>) target_semaphore(%140 : memref<!tpu.dma_semaphore, #tpu.memory_space<semaphore_mem>>)
      %c5_i32_82 = arith.constant 5 : i32
      %141 = arith.addi %99, %c5_i32_82 : i32
      %142 = arith.index_cast %141 : i32 to index
      %143 = memref.load %arg2[%142] : memref<128xi32, #tpu.memory_space<smem>>
      %c0_i32_83 = arith.constant 0 : i32
      %144 = tpu.memref_slice %arg4[%143, %c0_i32_83] : memref<256x128xf32, #tpu.memory_space<any>> -> memref<1x128xf32, #tpu.memory_space<any>>
      %c5_i32_84 = arith.constant 5 : i32
      %c0_i32_85 = arith.constant 0 : i32
      %145 = tpu.memref_slice %arg7[%100, %c5_i32_84, %c0_i32_85] : memref<2x16x128xf32, #tpu.memory_space<vmem>> -> memref<1x1x128xf32, #tpu.memory_space<vmem>>
      %146 = tpu.memref_squeeze %145 : memref<1x1x128xf32, #tpu.memory_space<vmem>> -> memref<1x128xf32, #tpu.memory_space<vmem>>
      %147 = tpu.memref_slice %arg8[%100] : memref<2x!tpu.dma_semaphore, #tpu.memory_space<semaphore_mem>> -> memref<1x!tpu.dma_semaphore, #tpu.memory_space<semaphore_mem>>
      %148 = tpu.memref_squeeze %147 : memref<1x!tpu.dma_semaphore, #tpu.memory_space<semaphore_mem>> -> memref<!tpu.dma_semaphore, #tpu.memory_space<semaphore_mem>>
      tpu.enqueue_dma source(%144 : memref<1x128xf32, #tpu.memory_space<any>>) target(%146 : memref<1x128xf32, #tpu.memory_space<vmem>>) target_semaphore(%148 : memref<!tpu.dma_semaphore, #tpu.memory_space<semaphore_mem>>)
      %c6_i32_86 = arith.constant 6 : i32
      %149 = arith.addi %99, %c6_i32_86 : i32
      %150 = arith.index_cast %149 : i32 to index
      %151 = memref.load %arg2[%150] : memref<128xi32, #tpu.memory_space<smem>>
      %c0_i32_87 = arith.constant 0 : i32
      %152 = tpu.memref_slice %arg4[%151, %c0_i32_87] : memref<256x128xf32, #tpu.memory_space<any>> -> memref<1x128xf32, #tpu.memory_space<any>>
      %c6_i32_88 = arith.constant 6 : i32
      %c0_i32_89 = arith.constant 0 : i32
      %153 = tpu.memref_slice %arg7[%100, %c6_i32_88, %c0_i32_89] : memref<2x16x128xf32, #tpu.memory_space<vmem>> -> memref<1x1x128xf32, #tpu.memory_space<vmem>>
      %154 = tpu.memref_squeeze %153 : memref<1x1x128xf32, #tpu.memory_space<vmem>> -> memref<1x128xf32, #tpu.memory_space<vmem>>
      %155 = tpu.memref_slice %arg8[%100] : memref<2x!tpu.dma_semaphore, #tpu.memory_space<semaphore_mem>> -> memref<1x!tpu.dma_semaphore, #tpu.memory_space<semaphore_mem>>
      %156 = tpu.memref_squeeze %155 : memref<1x!tpu.dma_semaphore, #tpu.memory_space<semaphore_mem>> -> memref<!tpu.dma_semaphore, #tpu.memory_space<semaphore_mem>>
      tpu.enqueue_dma source(%152 : memref<1x128xf32, #tpu.memory_space<any>>) target(%154 : memref<1x128xf32, #tpu.memory_space<vmem>>) target_semaphore(%156 : memref<!tpu.dma_semaphore, #tpu.memory_space<semaphore_mem>>)
      %c7_i32_90 = arith.constant 7 : i32
      %157 = arith.addi %99, %c7_i32_90 : i32
      %158 = arith.index_cast %157 : i32 to index
      %159 = memref.load %arg2[%158] : memref<128xi32, #tpu.memory_space<smem>>
      %c0_i32_91 = arith.constant 0 : i32
      %160 = tpu.memref_slice %arg4[%159, %c0_i32_91] : memref<256x128xf32, #tpu.memory_space<any>> -> memref<1x128xf32, #tpu.memory_space<any>>
      %c7_i32_92 = arith.constant 7 : i32
      %c0_i32_93 = arith.constant 0 : i32
      %161 = tpu.memref_slice %arg7[%100, %c7_i32_92, %c0_i32_93] : memref<2x16x128xf32, #tpu.memory_space<vmem>> -> memref<1x1x128xf32, #tpu.memory_space<vmem>>
      %162 = tpu.memref_squeeze %161 : memref<1x1x128xf32, #tpu.memory_space<vmem>> -> memref<1x128xf32, #tpu.memory_space<vmem>>
      %163 = tpu.memref_slice %arg8[%100] : memref<2x!tpu.dma_semaphore, #tpu.memory_space<semaphore_mem>> -> memref<1x!tpu.dma_semaphore, #tpu.memory_space<semaphore_mem>>
      %164 = tpu.memref_squeeze %163 : memref<1x!tpu.dma_semaphore, #tpu.memory_space<semaphore_mem>> -> memref<!tpu.dma_semaphore, #tpu.memory_space<semaphore_mem>>
      tpu.enqueue_dma source(%160 : memref<1x128xf32, #tpu.memory_space<any>>) target(%162 : memref<1x128xf32, #tpu.memory_space<vmem>>) target_semaphore(%164 : memref<!tpu.dma_semaphore, #tpu.memory_space<semaphore_mem>>)
      %c8_i32_94 = arith.constant 8 : i32
      %165 = arith.addi %99, %c8_i32_94 : i32
      %166 = arith.index_cast %165 : i32 to index
      %167 = memref.load %arg2[%166] : memref<128xi32, #tpu.memory_space<smem>>
      %c0_i32_95 = arith.constant 0 : i32
      %168 = tpu.memref_slice %arg4[%167, %c0_i32_95] : memref<256x128xf32, #tpu.memory_space<any>> -> memref<1x128xf32, #tpu.memory_space<any>>
      %c8_i32_96 = arith.constant 8 : i32
      %c0_i32_97 = arith.constant 0 : i32
      %169 = tpu.memref_slice %arg7[%100, %c8_i32_96, %c0_i32_97] : memref<2x16x128xf32, #tpu.memory_space<vmem>> -> memref<1x1x128xf32, #tpu.memory_space<vmem>>
      %170 = tpu.memref_squeeze %169 : memref<1x1x128xf32, #tpu.memory_space<vmem>> -> memref<1x128xf32, #tpu.memory_space<vmem>>
      %171 = tpu.memref_slice %arg8[%100] : memref<2x!tpu.dma_semaphore, #tpu.memory_space<semaphore_mem>> -> memref<1x!tpu.dma_semaphore, #tpu.memory_space<semaphore_mem>>
      %172 = tpu.memref_squeeze %171 : memref<1x!tpu.dma_semaphore, #tpu.memory_space<semaphore_mem>> -> memref<!tpu.dma_semaphore, #tpu.memory_space<semaphore_mem>>
      tpu.enqueue_dma source(%168 : memref<1x128xf32, #tpu.memory_space<any>>) target(%170 : memref<1x128xf32, #tpu.memory_space<vmem>>) target_semaphore(%172 : memref<!tpu.dma_semaphore, #tpu.memory_space<semaphore_mem>>)
      %c9_i32_98 = arith.constant 9 : i32
      %173 = arith.addi %99, %c9_i32_98 : i32
      %174 = arith.index_cast %173 : i32 to index
      %175 = memref.load %arg2[%174] : memref<128xi32, #tpu.memory_space<smem>>
      %c0_i32_99 = arith.constant 0 : i32
      %176 = tpu.memref_slice %arg4[%175, %c0_i32_99] : memref<256x128xf32, #tpu.memory_space<any>> -> memref<1x128xf32, #tpu.memory_space<any>>
      %c9_i32_100 = arith.constant 9 : i32
      %c0_i32_101 = arith.constant 0 : i32
      %177 = tpu.memref_slice %arg7[%100, %c9_i32_100, %c0_i32_101] : memref<2x16x128xf32, #tpu.memory_space<vmem>> -> memref<1x1x128xf32, #tpu.memory_space<vmem>>
      %178 = tpu.memref_squeeze %177 : memref<1x1x128xf32, #tpu.memory_space<vmem>> -> memref<1x128xf32, #tpu.memory_space<vmem>>
      %179 = tpu.memref_slice %arg8[%100] : memref<2x!tpu.dma_semaphore, #tpu.memory_space<semaphore_mem>> -> memref<1x!tpu.dma_semaphore, #tpu.memory_space<semaphore_mem>>
      %180 = tpu.memref_squeeze %179 : memref<1x!tpu.dma_semaphore, #tpu.memory_space<semaphore_mem>> -> memref<!tpu.dma_semaphore, #tpu.memory_space<semaphore_mem>>
      tpu.enqueue_dma source(%176 : memref<1x128xf32, #tpu.memory_space<any>>) target(%178 : memref<1x128xf32, #tpu.memory_space<vmem>>) target_semaphore(%180 : memref<!tpu.dma_semaphore, #tpu.memory_space<semaphore_mem>>)
      %c10_i32_102 = arith.constant 10 : i32
      %181 = arith.addi %99, %c10_i32_102 : i32
      %182 = arith.index_cast %181 : i32 to index
      %183 = memref.load %arg2[%182] : memref<128xi32, #tpu.memory_space<smem>>
      %c0_i32_103 = arith.constant 0 : i32
      %184 = tpu.memref_slice %arg4[%183, %c0_i32_103] : memref<256x128xf32, #tpu.memory_space<any>> -> memref<1x128xf32, #tpu.memory_space<any>>
      %c10_i32_104 = arith.constant 10 : i32
      %c0_i32_105 = arith.constant 0 : i32
      %185 = tpu.memref_slice %arg7[%100, %c10_i32_104, %c0_i32_105] : memref<2x16x128xf32, #tpu.memory_space<vmem>> -> memref<1x1x128xf32, #tpu.memory_space<vmem>>
      %186 = tpu.memref_squeeze %185 : memref<1x1x128xf32, #tpu.memory_space<vmem>> -> memref<1x128xf32, #tpu.memory_space<vmem>>
      %187 = tpu.memref_slice %arg8[%100] : memref<2x!tpu.dma_semaphore, #tpu.memory_space<semaphore_mem>> -> memref<1x!tpu.dma_semaphore, #tpu.memory_space<semaphore_mem>>
      %188 = tpu.memref_squeeze %187 : memref<1x!tpu.dma_semaphore, #tpu.memory_space<semaphore_mem>> -> memref<!tpu.dma_semaphore, #tpu.memory_space<semaphore_mem>>
      tpu.enqueue_dma source(%184 : memref<1x128xf32, #tpu.memory_space<any>>) target(%186 : memref<1x128xf32, #tpu.memory_space<vmem>>) target_semaphore(%188 : memref<!tpu.dma_semaphore, #tpu.memory_space<semaphore_mem>>)
      %c11_i32_106 = arith.constant 11 : i32
      %189 = arith.addi %99, %c11_i32_106 : i32
      %190 = arith.index_cast %189 : i32 to index
      %191 = memref.load %arg2[%190] : memref<128xi32, #tpu.memory_space<smem>>
      %c0_i32_107 = arith.constant 0 : i32
      %192 = tpu.memref_slice %arg4[%191, %c0_i32_107] : memref<256x128xf32, #tpu.memory_space<any>> -> memref<1x128xf32, #tpu.memory_space<any>>
      %c11_i32_108 = arith.constant 11 : i32
      %c0_i32_109 = arith.constant 0 : i32
      %193 = tpu.memref_slice %arg7[%100, %c11_i32_108, %c0_i32_109] : memref<2x16x128xf32, #tpu.memory_space<vmem>> -> memref<1x1x128xf32, #tpu.memory_space<vmem>>
      %194 = tpu.memref_squeeze %193 : memref<1x1x128xf32, #tpu.memory_space<vmem>> -> memref<1x128xf32, #tpu.memory_space<vmem>>
      %195 = tpu.memref_slice %arg8[%100] : memref<2x!tpu.dma_semaphore, #tpu.memory_space<semaphore_mem>> -> memref<1x!tpu.dma_semaphore, #tpu.memory_space<semaphore_mem>>
      %196 = tpu.memref_squeeze %195 : memref<1x!tpu.dma_semaphore, #tpu.memory_space<semaphore_mem>> -> memref<!tpu.dma_semaphore, #tpu.memory_space<semaphore_mem>>
      tpu.enqueue_dma source(%192 : memref<1x128xf32, #tpu.memory_space<any>>) target(%194 : memref<1x128xf32, #tpu.memory_space<vmem>>) target_semaphore(%196 : memref<!tpu.dma_semaphore, #tpu.memory_space<semaphore_mem>>)
      %c12_i32_110 = arith.constant 12 : i32
      %197 = arith.addi %99, %c12_i32_110 : i32
      %198 = arith.index_cast %197 : i32 to index
      %199 = memref.load %arg2[%198] : memref<128xi32, #tpu.memory_space<smem>>
      %c0_i32_111 = arith.constant 0 : i32
      %200 = tpu.memref_slice %arg4[%199, %c0_i32_111] : memref<256x128xf32, #tpu.memory_space<any>> -> memref<1x128xf32, #tpu.memory_space<any>>
      %c12_i32_112 = arith.constant 12 : i32
      %c0_i32_113 = arith.constant 0 : i32
      %201 = tpu.memref_slice %arg7[%100, %c12_i32_112, %c0_i32_113] : memref<2x16x128xf32, #tpu.memory_space<vmem>> -> memref<1x1x128xf32, #tpu.memory_space<vmem>>
      %202 = tpu.memref_squeeze %201 : memref<1x1x128xf32, #tpu.memory_space<vmem>> -> memref<1x128xf32, #tpu.memory_space<vmem>>
      %203 = tpu.memref_slice %arg8[%100] : memref<2x!tpu.dma_semaphore, #tpu.memory_space<semaphore_mem>> -> memref<1x!tpu.dma_semaphore, #tpu.memory_space<semaphore_mem>>
      %204 = tpu.memref_squeeze %203 : memref<1x!tpu.dma_semaphore, #tpu.memory_space<semaphore_mem>> -> memref<!tpu.dma_semaphore, #tpu.memory_space<semaphore_mem>>
      tpu.enqueue_dma source(%200 : memref<1x128xf32, #tpu.memory_space<any>>) target(%202 : memref<1x128xf32, #tpu.memory_space<vmem>>) target_semaphore(%204 : memref<!tpu.dma_semaphore, #tpu.memory_space<semaphore_mem>>)
      %c13_i32_114 = arith.constant 13 : i32
      %205 = arith.addi %99, %c13_i32_114 : i32
      %206 = arith.index_cast %205 : i32 to index
      %207 = memref.load %arg2[%206] : memref<128xi32, #tpu.memory_space<smem>>
      %c0_i32_115 = arith.constant 0 : i32
      %208 = tpu.memref_slice %arg4[%207, %c0_i32_115] : memref<256x128xf32, #tpu.memory_space<any>> -> memref<1x128xf32, #tpu.memory_space<any>>
      %c13_i32_116 = arith.constant 13 : i32
      %c0_i32_117 = arith.constant 0 : i32
      %209 = tpu.memref_slice %arg7[%100, %c13_i32_116, %c0_i32_117] : memref<2x16x128xf32, #tpu.memory_space<vmem>> -> memref<1x1x128xf32, #tpu.memory_space<vmem>>
      %210 = tpu.memref_squeeze %209 : memref<1x1x128xf32, #tpu.memory_space<vmem>> -> memref<1x128xf32, #tpu.memory_space<vmem>>
      %211 = tpu.memref_slice %arg8[%100] : memref<2x!tpu.dma_semaphore, #tpu.memory_space<semaphore_mem>> -> memref<1x!tpu.dma_semaphore, #tpu.memory_space<semaphore_mem>>
      %212 = tpu.memref_squeeze %211 : memref<1x!tpu.dma_semaphore, #tpu.memory_space<semaphore_mem>> -> memref<!tpu.dma_semaphore, #tpu.memory_space<semaphore_mem>>
      tpu.enqueue_dma source(%208 : memref<1x128xf32, #tpu.memory_space<any>>) target(%210 : memref<1x128xf32, #tpu.memory_space<vmem>>) target_semaphore(%212 : memref<!tpu.dma_semaphore, #tpu.memory_space<semaphore_mem>>)
      %c14_i32_118 = arith.constant 14 : i32
      %213 = arith.addi %99, %c14_i32_118 : i32
      %214 = arith.index_cast %213 : i32 to index
      %215 = memref.load %arg2[%214] : memref<128xi32, #tpu.memory_space<smem>>
      %c0_i32_119 = arith.constant 0 : i32
      %216 = tpu.memref_slice %arg4[%215, %c0_i32_119] : memref<256x128xf32, #tpu.memory_space<any>> -> memref<1x128xf32, #tpu.memory_space<any>>
      %c14_i32_120 = arith.constant 14 : i32
      %c0_i32_121 = arith.constant 0 : i32
      %217 = tpu.memref_slice %arg7[%100, %c14_i32_120, %c0_i32_121] : memref<2x16x128xf32, #tpu.memory_space<vmem>> -> memref<1x1x128xf32, #tpu.memory_space<vmem>>
      %218 = tpu.memref_squeeze %217 : memref<1x1x128xf32, #tpu.memory_space<vmem>> -> memref<1x128xf32, #tpu.memory_space<vmem>>
      %219 = tpu.memref_slice %arg8[%100] : memref<2x!tpu.dma_semaphore, #tpu.memory_space<semaphore_mem>> -> memref<1x!tpu.dma_semaphore, #tpu.memory_space<semaphore_mem>>
      %220 = tpu.memref_squeeze %219 : memref<1x!tpu.dma_semaphore, #tpu.memory_space<semaphore_mem>> -> memref<!tpu.dma_semaphore, #tpu.memory_space<semaphore_mem>>
      tpu.enqueue_dma source(%216 : memref<1x128xf32, #tpu.memory_space<any>>) target(%218 : memref<1x128xf32, #tpu.memory_space<vmem>>) target_semaphore(%220 : memref<!tpu.dma_semaphore, #tpu.memory_space<semaphore_mem>>)
      %c15_i32_122 = arith.constant 15 : i32
      %221 = arith.addi %99, %c15_i32_122 : i32
      %222 = arith.index_cast %221 : i32 to index
      %223 = memref.load %arg2[%222] : memref<128xi32, #tpu.memory_space<smem>>
      %c0_i32_123 = arith.constant 0 : i32
      %224 = tpu.memref_slice %arg4[%223, %c0_i32_123] : memref<256x128xf32, #tpu.memory_space<any>> -> memref<1x128xf32, #tpu.memory_space<any>>
      %c15_i32_124 = arith.constant 15 : i32
      %c0_i32_125 = arith.constant 0 : i32
      %225 = tpu.memref_slice %arg7[%100, %c15_i32_124, %c0_i32_125] : memref<2x16x128xf32, #tpu.memory_space<vmem>> -> memref<1x1x128xf32, #tpu.memory_space<vmem>>
      %226 = tpu.memref_squeeze %225 : memref<1x1x128xf32, #tpu.memory_space<vmem>> -> memref<1x128xf32, #tpu.memory_space<vmem>>
      %227 = tpu.memref_slice %arg8[%100] : memref<2x!tpu.dma_semaphore, #tpu.memory_space<semaphore_mem>> -> memref<1x!tpu.dma_semaphore, #tpu.memory_space<semaphore_mem>>
      %228 = tpu.memref_squeeze %227 : memref<1x!tpu.dma_semaphore, #tpu.memory_space<semaphore_mem>> -> memref<!tpu.dma_semaphore, #tpu.memory_space<semaphore_mem>>
      tpu.enqueue_dma source(%224 : memref<1x128xf32, #tpu.memory_space<any>>) target(%226 : memref<1x128xf32, #tpu.memory_space<vmem>>) target_semaphore(%228 : memref<!tpu.dma_semaphore, #tpu.memory_space<semaphore_mem>>)
    } else {
    }
    %c0_i32_2 = arith.constant 0 : i32
    %c0_i32_3 = arith.constant 0 : i32
    %11 = tpu.memref_slice %arg4[%c0_i32_2, %c0_i32_3] : memref<256x128xf32, #tpu.memory_space<any>> -> memref<1x128xf32, #tpu.memory_space<any>>
    %c0_i32_4 = arith.constant 0 : i32
    %c0_i32_5 = arith.constant 0 : i32
    %12 = tpu.memref_slice %arg7[%3, %c0_i32_4, %c0_i32_5] : memref<2x16x128xf32, #tpu.memory_space<vmem>> -> memref<1x1x128xf32, #tpu.memory_space<vmem>>
    %13 = tpu.memref_squeeze %12 : memref<1x1x128xf32, #tpu.memory_space<vmem>> -> memref<1x128xf32, #tpu.memory_space<vmem>>
    %14 = tpu.memref_slice %arg8[%3] : memref<2x!tpu.dma_semaphore, #tpu.memory_space<semaphore_mem>> -> memref<1x!tpu.dma_semaphore, #tpu.memory_space<semaphore_mem>>
    %15 = tpu.memref_squeeze %14 : memref<1x!tpu.dma_semaphore, #tpu.memory_space<semaphore_mem>> -> memref<!tpu.dma_semaphore, #tpu.memory_space<semaphore_mem>>
    tpu.wait_dma2 semaphore(%15 : memref<!tpu.dma_semaphore, #tpu.memory_space<semaphore_mem>>) src(%11 : memref<1x128xf32, #tpu.memory_space<any>>) dst(%13 : memref<1x128xf32, #tpu.memory_space<vmem>>)
    %c0_i32_6 = arith.constant 0 : i32
    %c0_i32_7 = arith.constant 0 : i32
    %16 = tpu.memref_slice %arg4[%c0_i32_6, %c0_i32_7] : memref<256x128xf32, #tpu.memory_space<any>> -> memref<1x128xf32, #tpu.memory_space<any>>
    %c1_i32_8 = arith.constant 1 : i32
    %c0_i32_9 = arith.constant 0 : i32
    %17 = tpu.memref_slice %arg7[%3, %c1_i32_8, %c0_i32_9] : memref<2x16x128xf32, #tpu.memory_space<vmem>> -> memref<1x1x128xf32, #tpu.memory_space<vmem>>
    %18 = tpu.memref_squeeze %17 : memref<1x1x128xf32, #tpu.memory_space<vmem>> -> memref<1x128xf32, #tpu.memory_space<vmem>>
    %19 = tpu.memref_slice %arg8[%3] : memref<2x!tpu.dma_semaphore, #tpu.memory_space<semaphore_mem>> -> memref<1x!tpu.dma_semaphore, #tpu.memory_space<semaphore_mem>>
    %20 = tpu.memref_squeeze %19 : memref<1x!tpu.dma_semaphore, #tpu.memory_space<semaphore_mem>> -> memref<!tpu.dma_semaphore, #tpu.memory_space<semaphore_mem>>
    tpu.wait_dma2 semaphore(%20 : memref<!tpu.dma_semaphore, #tpu.memory_space<semaphore_mem>>) src(%16 : memref<1x128xf32, #tpu.memory_space<any>>) dst(%18 : memref<1x128xf32, #tpu.memory_space<vmem>>)
    %c0_i32_10 = arith.constant 0 : i32
    %c0_i32_11 = arith.constant 0 : i32
    %21 = tpu.memref_slice %arg4[%c0_i32_10, %c0_i32_11] : memref<256x128xf32, #tpu.memory_space<any>> -> memref<1x128xf32, #tpu.memory_space<any>>
    %c2_i32_12 = arith.constant 2 : i32
    %c0_i32_13 = arith.constant 0 : i32
    %22 = tpu.memref_slice %arg7[%3, %c2_i32_12, %c0_i32_13] : memref<2x16x128xf32, #tpu.memory_space<vmem>> -> memref<1x1x128xf32, #tpu.memory_space<vmem>>
    %23 = tpu.memref_squeeze %22 : memref<1x1x128xf32, #tpu.memory_space<vmem>> -> memref<1x128xf32, #tpu.memory_space<vmem>>
    %24 = tpu.memref_slice %arg8[%3] : memref<2x!tpu.dma_semaphore, #tpu.memory_space<semaphore_mem>> -> memref<1x!tpu.dma_semaphore, #tpu.memory_space<semaphore_mem>>
    %25 = tpu.memref_squeeze %24 : memref<1x!tpu.dma_semaphore, #tpu.memory_space<semaphore_mem>> -> memref<!tpu.dma_semaphore, #tpu.memory_space<semaphore_mem>>
    tpu.wait_dma2 semaphore(%25 : memref<!tpu.dma_semaphore, #tpu.memory_space<semaphore_mem>>) src(%21 : memref<1x128xf32, #tpu.memory_space<any>>) dst(%23 : memref<1x128xf32, #tpu.memory_space<vmem>>)
    %c0_i32_14 = arith.constant 0 : i32
    %c0_i32_15 = arith.constant 0 : i32
    %26 = tpu.memref_slice %arg4[%c0_i32_14, %c0_i32_15] : memref<256x128xf32, #tpu.memory_space<any>> -> memref<1x128xf32, #tpu.memory_space<any>>
    %c3_i32 = arith.constant 3 : i32
    %c0_i32_16 = arith.constant 0 : i32
    %27 = tpu.memref_slice %arg7[%3, %c3_i32, %c0_i32_16] : memref<2x16x128xf32, #tpu.memory_space<vmem>> -> memref<1x1x128xf32, #tpu.memory_space<vmem>>
    %28 = tpu.memref_squeeze %27 : memref<1x1x128xf32, #tpu.memory_space<vmem>> -> memref<1x128xf32, #tpu.memory_space<vmem>>
    %29 = tpu.memref_slice %arg8[%3] : memref<2x!tpu.dma_semaphore, #tpu.memory_space<semaphore_mem>> -> memref<1x!tpu.dma_semaphore, #tpu.memory_space<semaphore_mem>>
    %30 = tpu.memref_squeeze %29 : memref<1x!tpu.dma_semaphore, #tpu.memory_space<semaphore_mem>> -> memref<!tpu.dma_semaphore, #tpu.memory_space<semaphore_mem>>
    tpu.wait_dma2 semaphore(%30 : memref<!tpu.dma_semaphore, #tpu.memory_space<semaphore_mem>>) src(%26 : memref<1x128xf32, #tpu.memory_space<any>>) dst(%28 : memref<1x128xf32, #tpu.memory_space<vmem>>)
    %c0_i32_17 = arith.constant 0 : i32
    %c0_i32_18 = arith.constant 0 : i32
    %31 = tpu.memref_slice %arg4[%c0_i32_17, %c0_i32_18] : memref<256x128xf32, #tpu.memory_space<any>> -> memref<1x128xf32, #tpu.memory_space<any>>
    %c4_i32_19 = arith.constant 4 : i32
    %c0_i32_20 = arith.constant 0 : i32
    %32 = tpu.memref_slice %arg7[%3, %c4_i32_19, %c0_i32_20] : memref<2x16x128xf32, #tpu.memory_space<vmem>> -> memref<1x1x128xf32, #tpu.memory_space<vmem>>
    %33 = tpu.memref_squeeze %32 : memref<1x1x128xf32, #tpu.memory_space<vmem>> -> memref<1x128xf32, #tpu.memory_space<vmem>>
    %34 = tpu.memref_slice %arg8[%3] : memref<2x!tpu.dma_semaphore, #tpu.memory_space<semaphore_mem>> -> memref<1x!tpu.dma_semaphore, #tpu.memory_space<semaphore_mem>>
    %35 = tpu.memref_squeeze %34 : memref<1x!tpu.dma_semaphore, #tpu.memory_space<semaphore_mem>> -> memref<!tpu.dma_semaphore, #tpu.memory_space<semaphore_mem>>
    tpu.wait_dma2 semaphore(%35 : memref<!tpu.dma_semaphore, #tpu.memory_space<semaphore_mem>>) src(%31 : memref<1x128xf32, #tpu.memory_space<any>>) dst(%33 : memref<1x128xf32, #tpu.memory_space<vmem>>)
    %c0_i32_21 = arith.constant 0 : i32
    %c0_i32_22 = arith.constant 0 : i32
    %36 = tpu.memref_slice %arg4[%c0_i32_21, %c0_i32_22] : memref<256x128xf32, #tpu.memory_space<any>> -> memref<1x128xf32, #tpu.memory_space<any>>
    %c5_i32 = arith.constant 5 : i32
    %c0_i32_23 = arith.constant 0 : i32
    %37 = tpu.memref_slice %arg7[%3, %c5_i32, %c0_i32_23] : memref<2x16x128xf32, #tpu.memory_space<vmem>> -> memref<1x1x128xf32, #tpu.memory_space<vmem>>
    %38 = tpu.memref_squeeze %37 : memref<1x1x128xf32, #tpu.memory_space<vmem>> -> memref<1x128xf32, #tpu.memory_space<vmem>>
    %39 = tpu.memref_slice %arg8[%3] : memref<2x!tpu.dma_semaphore, #tpu.memory_space<semaphore_mem>> -> memref<1x!tpu.dma_semaphore, #tpu.memory_space<semaphore_mem>>
    %40 = tpu.memref_squeeze %39 : memref<1x!tpu.dma_semaphore, #tpu.memory_space<semaphore_mem>> -> memref<!tpu.dma_semaphore, #tpu.memory_space<semaphore_mem>>
    tpu.wait_dma2 semaphore(%40 : memref<!tpu.dma_semaphore, #tpu.memory_space<semaphore_mem>>) src(%36 : memref<1x128xf32, #tpu.memory_space<any>>) dst(%38 : memref<1x128xf32, #tpu.memory_space<vmem>>)
    %c0_i32_24 = arith.constant 0 : i32
    %c0_i32_25 = arith.constant 0 : i32
    %41 = tpu.memref_slice %arg4[%c0_i32_24, %c0_i32_25] : memref<256x128xf32, #tpu.memory_space<any>> -> memref<1x128xf32, #tpu.memory_space<any>>
    %c6_i32 = arith.constant 6 : i32
    %c0_i32_26 = arith.constant 0 : i32
    %42 = tpu.memref_slice %arg7[%3, %c6_i32, %c0_i32_26] : memref<2x16x128xf32, #tpu.memory_space<vmem>> -> memref<1x1x128xf32, #tpu.memory_space<vmem>>
    %43 = tpu.memref_squeeze %42 : memref<1x1x128xf32, #tpu.memory_space<vmem>> -> memref<1x128xf32, #tpu.memory_space<vmem>>
    %44 = tpu.memref_slice %arg8[%3] : memref<2x!tpu.dma_semaphore, #tpu.memory_space<semaphore_mem>> -> memref<1x!tpu.dma_semaphore, #tpu.memory_space<semaphore_mem>>
    %45 = tpu.memref_squeeze %44 : memref<1x!tpu.dma_semaphore, #tpu.memory_space<semaphore_mem>> -> memref<!tpu.dma_semaphore, #tpu.memory_space<semaphore_mem>>
    tpu.wait_dma2 semaphore(%45 : memref<!tpu.dma_semaphore, #tpu.memory_space<semaphore_mem>>) src(%41 : memref<1x128xf32, #tpu.memory_space<any>>) dst(%43 : memref<1x128xf32, #tpu.memory_space<vmem>>)
    %c0_i32_27 = arith.constant 0 : i32
    %c0_i32_28 = arith.constant 0 : i32
    %46 = tpu.memref_slice %arg4[%c0_i32_27, %c0_i32_28] : memref<256x128xf32, #tpu.memory_space<any>> -> memref<1x128xf32, #tpu.memory_space<any>>
    %c7_i32 = arith.constant 7 : i32
    %c0_i32_29 = arith.constant 0 : i32
    %47 = tpu.memref_slice %arg7[%3, %c7_i32, %c0_i32_29] : memref<2x16x128xf32, #tpu.memory_space<vmem>> -> memref<1x1x128xf32, #tpu.memory_space<vmem>>
    %48 = tpu.memref_squeeze %47 : memref<1x1x128xf32, #tpu.memory_space<vmem>> -> memref<1x128xf32, #tpu.memory_space<vmem>>
    %49 = tpu.memref_slice %arg8[%3] : memref<2x!tpu.dma_semaphore, #tpu.memory_space<semaphore_mem>> -> memref<1x!tpu.dma_semaphore, #tpu.memory_space<semaphore_mem>>
    %50 = tpu.memref_squeeze %49 : memref<1x!tpu.dma_semaphore, #tpu.memory_space<semaphore_mem>> -> memref<!tpu.dma_semaphore, #tpu.memory_space<semaphore_mem>>
    tpu.wait_dma2 semaphore(%50 : memref<!tpu.dma_semaphore, #tpu.memory_space<semaphore_mem>>) src(%46 : memref<1x128xf32, #tpu.memory_space<any>>) dst(%48 : memref<1x128xf32, #tpu.memory_space<vmem>>)
    %c0_i32_30 = arith.constant 0 : i32
    %c0_i32_31 = arith.constant 0 : i32
    %51 = tpu.memref_slice %arg4[%c0_i32_30, %c0_i32_31] : memref<256x128xf32, #tpu.memory_space<any>> -> memref<1x128xf32, #tpu.memory_space<any>>
    %c8_i32 = arith.constant 8 : i32
    %c0_i32_32 = arith.constant 0 : i32
    %52 = tpu.memref_slice %arg7[%3, %c8_i32, %c0_i32_32] : memref<2x16x128xf32, #tpu.memory_space<vmem>> -> memref<1x1x128xf32, #tpu.memory_space<vmem>>
    %53 = tpu.memref_squeeze %52 : memref<1x1x128xf32, #tpu.memory_space<vmem>> -> memref<1x128xf32, #tpu.memory_space<vmem>>
    %54 = tpu.memref_slice %arg8[%3] : memref<2x!tpu.dma_semaphore, #tpu.memory_space<semaphore_mem>> -> memref<1x!tpu.dma_semaphore, #tpu.memory_space<semaphore_mem>>
    %55 = tpu.memref_squeeze %54 : memref<1x!tpu.dma_semaphore, #tpu.memory_space<semaphore_mem>> -> memref<!tpu.dma_semaphore, #tpu.memory_space<semaphore_mem>>
    tpu.wait_dma2 semaphore(%55 : memref<!tpu.dma_semaphore, #tpu.memory_space<semaphore_mem>>) src(%51 : memref<1x128xf32, #tpu.memory_space<any>>) dst(%53 : memref<1x128xf32, #tpu.memory_space<vmem>>)
    %c0_i32_33 = arith.constant 0 : i32
    %c0_i32_34 = arith.constant 0 : i32
    %56 = tpu.memref_slice %arg4[%c0_i32_33, %c0_i32_34] : memref<256x128xf32, #tpu.memory_space<any>> -> memref<1x128xf32, #tpu.memory_space<any>>
    %c9_i32 = arith.constant 9 : i32
    %c0_i32_35 = arith.constant 0 : i32
    %57 = tpu.memref_slice %arg7[%3, %c9_i32, %c0_i32_35] : memref<2x16x128xf32, #tpu.memory_space<vmem>> -> memref<1x1x128xf32, #tpu.memory_space<vmem>>
    %58 = tpu.memref_squeeze %57 : memref<1x1x128xf32, #tpu.memory_space<vmem>> -> memref<1x128xf32, #tpu.memory_space<vmem>>
    %59 = tpu.memref_slice %arg8[%3] : memref<2x!tpu.dma_semaphore, #tpu.memory_space<semaphore_mem>> -> memref<1x!tpu.dma_semaphore, #tpu.memory_space<semaphore_mem>>
    %60 = tpu.memref_squeeze %59 : memref<1x!tpu.dma_semaphore, #tpu.memory_space<semaphore_mem>> -> memref<!tpu.dma_semaphore, #tpu.memory_space<semaphore_mem>>
    tpu.wait_dma2 semaphore(%60 : memref<!tpu.dma_semaphore, #tpu.memory_space<semaphore_mem>>) src(%56 : memref<1x128xf32, #tpu.memory_space<any>>) dst(%58 : memref<1x128xf32, #tpu.memory_space<vmem>>)
    %c0_i32_36 = arith.constant 0 : i32
    %c0_i32_37 = arith.constant 0 : i32
    %61 = tpu.memref_slice %arg4[%c0_i32_36, %c0_i32_37] : memref<256x128xf32, #tpu.memory_space<any>> -> memref<1x128xf32, #tpu.memory_space<any>>
    %c10_i32 = arith.constant 10 : i32
    %c0_i32_38 = arith.constant 0 : i32
    %62 = tpu.memref_slice %arg7[%3, %c10_i32, %c0_i32_38] : memref<2x16x128xf32, #tpu.memory_space<vmem>> -> memref<1x1x128xf32, #tpu.memory_space<vmem>>
    %63 = tpu.memref_squeeze %62 : memref<1x1x128xf32, #tpu.memory_space<vmem>> -> memref<1x128xf32, #tpu.memory_space<vmem>>
    %64 = tpu.memref_slice %arg8[%3] : memref<2x!tpu.dma_semaphore, #tpu.memory_space<semaphore_mem>> -> memref<1x!tpu.dma_semaphore, #tpu.memory_space<semaphore_mem>>
    %65 = tpu.memref_squeeze %64 : memref<1x!tpu.dma_semaphore, #tpu.memory_space<semaphore_mem>> -> memref<!tpu.dma_semaphore, #tpu.memory_space<semaphore_mem>>
    tpu.wait_dma2 semaphore(%65 : memref<!tpu.dma_semaphore, #tpu.memory_space<semaphore_mem>>) src(%61 : memref<1x128xf32, #tpu.memory_space<any>>) dst(%63 : memref<1x128xf32, #tpu.memory_space<vmem>>)
    %c0_i32_39 = arith.constant 0 : i32
    %c0_i32_40 = arith.constant 0 : i32
    %66 = tpu.memref_slice %arg4[%c0_i32_39, %c0_i32_40] : memref<256x128xf32, #tpu.memory_space<any>> -> memref<1x128xf32, #tpu.memory_space<any>>
    %c11_i32 = arith.constant 11 : i32
    %c0_i32_41 = arith.constant 0 : i32
    %67 = tpu.memref_slice %arg7[%3, %c11_i32, %c0_i32_41] : memref<2x16x128xf32, #tpu.memory_space<vmem>> -> memref<1x1x128xf32, #tpu.memory_space<vmem>>
    %68 = tpu.memref_squeeze %67 : memref<1x1x128xf32, #tpu.memory_space<vmem>> -> memref<1x128xf32, #tpu.memory_space<vmem>>
    %69 = tpu.memref_slice %arg8[%3] : memref<2x!tpu.dma_semaphore, #tpu.memory_space<semaphore_mem>> -> memref<1x!tpu.dma_semaphore, #tpu.memory_space<semaphore_mem>>
    %70 = tpu.memref_squeeze %69 : memref<1x!tpu.dma_semaphore, #tpu.memory_space<semaphore_mem>> -> memref<!tpu.dma_semaphore, #tpu.memory_space<semaphore_mem>>
    tpu.wait_dma2 semaphore(%70 : memref<!tpu.dma_semaphore, #tpu.memory_space<semaphore_mem>>) src(%66 : memref<1x128xf32, #tpu.memory_space<any>>) dst(%68 : memref<1x128xf32, #tpu.memory_space<vmem>>)
    %c0_i32_42 = arith.constant 0 : i32
    %c0_i32_43 = arith.constant 0 : i32
    %71 = tpu.memref_slice %arg4[%c0_i32_42, %c0_i32_43] : memref<256x128xf32, #tpu.memory_space<any>> -> memref<1x128xf32, #tpu.memory_space<any>>
    %c12_i32 = arith.constant 12 : i32
    %c0_i32_44 = arith.constant 0 : i32
    %72 = tpu.memref_slice %arg7[%3, %c12_i32, %c0_i32_44] : memref<2x16x128xf32, #tpu.memory_space<vmem>> -> memref<1x1x128xf32, #tpu.memory_space<vmem>>
    %73 = tpu.memref_squeeze %72 : memref<1x1x128xf32, #tpu.memory_space<vmem>> -> memref<1x128xf32, #tpu.memory_space<vmem>>
    %74 = tpu.memref_slice %arg8[%3] : memref<2x!tpu.dma_semaphore, #tpu.memory_space<semaphore_mem>> -> memref<1x!tpu.dma_semaphore, #tpu.memory_space<semaphore_mem>>
    %75 = tpu.memref_squeeze %74 : memref<1x!tpu.dma_semaphore, #tpu.memory_space<semaphore_mem>> -> memref<!tpu.dma_semaphore, #tpu.memory_space<semaphore_mem>>
    tpu.wait_dma2 semaphore(%75 : memref<!tpu.dma_semaphore, #tpu.memory_space<semaphore_mem>>) src(%71 : memref<1x128xf32, #tpu.memory_space<any>>) dst(%73 : memref<1x128xf32, #tpu.memory_space<vmem>>)
    %c0_i32_45 = arith.constant 0 : i32
    %c0_i32_46 = arith.constant 0 : i32
    %76 = tpu.memref_slice %arg4[%c0_i32_45, %c0_i32_46] : memref<256x128xf32, #tpu.memory_space<any>> -> memref<1x128xf32, #tpu.memory_space<any>>
    %c13_i32 = arith.constant 13 : i32
    %c0_i32_47 = arith.constant 0 : i32
    %77 = tpu.memref_slice %arg7[%3, %c13_i32, %c0_i32_47] : memref<2x16x128xf32, #tpu.memory_space<vmem>> -> memref<1x1x128xf32, #tpu.memory_space<vmem>>
    %78 = tpu.memref_squeeze %77 : memref<1x1x128xf32, #tpu.memory_space<vmem>> -> memref<1x128xf32, #tpu.memory_space<vmem>>
    %79 = tpu.memref_slice %arg8[%3] : memref<2x!tpu.dma_semaphore, #tpu.memory_space<semaphore_mem>> -> memref<1x!tpu.dma_semaphore, #tpu.memory_space<semaphore_mem>>
    %80 = tpu.memref_squeeze %79 : memref<1x!tpu.dma_semaphore, #tpu.memory_space<semaphore_mem>> -> memref<!tpu.dma_semaphore, #tpu.memory_space<semaphore_mem>>
    tpu.wait_dma2 semaphore(%80 : memref<!tpu.dma_semaphore, #tpu.memory_space<semaphore_mem>>) src(%76 : memref<1x128xf32, #tpu.memory_space<any>>) dst(%78 : memref<1x128xf32, #tpu.memory_space<vmem>>)
    %c0_i32_48 = arith.constant 0 : i32
    %c0_i32_49 = arith.constant 0 : i32
    %81 = tpu.memref_slice %arg4[%c0_i32_48, %c0_i32_49] : memref<256x128xf32, #tpu.memory_space<any>> -> memref<1x128xf32, #tpu.memory_space<any>>
    %c14_i32 = arith.constant 14 : i32
    %c0_i32_50 = arith.constant 0 : i32
    %82 = tpu.memref_slice %arg7[%3, %c14_i32, %c0_i32_50] : memref<2x16x128xf32, #tpu.memory_space<vmem>> -> memref<1x1x128xf32, #tpu.memory_space<vmem>>
    %83 = tpu.memref_squeeze %82 : memref<1x1x128xf32, #tpu.memory_space<vmem>> -> memref<1x128xf32, #tpu.memory_space<vmem>>
    %84 = tpu.memref_slice %arg8[%3] : memref<2x!tpu.dma_semaphore, #tpu.memory_space<semaphore_mem>> -> memref<1x!tpu.dma_semaphore, #tpu.memory_space<semaphore_mem>>
    %85 = tpu.memref_squeeze %84 : memref<1x!tpu.dma_semaphore, #tpu.memory_space<semaphore_mem>> -> memref<!tpu.dma_semaphore, #tpu.memory_space<semaphore_mem>>
    tpu.wait_dma2 semaphore(%85 : memref<!tpu.dma_semaphore, #tpu.memory_space<semaphore_mem>>) src(%81 : memref<1x128xf32, #tpu.memory_space<any>>) dst(%83 : memref<1x128xf32, #tpu.memory_space<vmem>>)
    %c0_i32_51 = arith.constant 0 : i32
    %c0_i32_52 = arith.constant 0 : i32
    %86 = tpu.memref_slice %arg4[%c0_i32_51, %c0_i32_52] : memref<256x128xf32, #tpu.memory_space<any>> -> memref<1x128xf32, #tpu.memory_space<any>>
    %c15_i32 = arith.constant 15 : i32
    %c0_i32_53 = arith.constant 0 : i32
    %87 = tpu.memref_slice %arg7[%3, %c15_i32, %c0_i32_53] : memref<2x16x128xf32, #tpu.memory_space<vmem>> -> memref<1x1x128xf32, #tpu.memory_space<vmem>>
    %88 = tpu.memref_squeeze %87 : memref<1x1x128xf32, #tpu.memory_space<vmem>> -> memref<1x128xf32, #tpu.memory_space<vmem>>
    %89 = tpu.memref_slice %arg8[%3] : memref<2x!tpu.dma_semaphore, #tpu.memory_space<semaphore_mem>> -> memref<1x!tpu.dma_semaphore, #tpu.memory_space<semaphore_mem>>
    %90 = tpu.memref_squeeze %89 : memref<1x!tpu.dma_semaphore, #tpu.memory_space<semaphore_mem>> -> memref<!tpu.dma_semaphore, #tpu.memory_space<semaphore_mem>>
    tpu.wait_dma2 semaphore(%90 : memref<!tpu.dma_semaphore, #tpu.memory_space<semaphore_mem>>) src(%86 : memref<1x128xf32, #tpu.memory_space<any>>) dst(%88 : memref<1x128xf32, #tpu.memory_space<vmem>>)
    %91 = arith.index_cast %3 : i32 to index
    %c0 = arith.constant 0 : index
    %c0_54 = arith.constant 0 : index
    %92 = vector.load %arg7[%91, %c0, %c0_54] : memref<2x16x128xf32, #tpu.memory_space<vmem>>, vector<1x16x128xf32>
    %93 = vector.shape_cast %92 : vector<1x16x128xf32> to vector<16x128xf32>
    %c0_55 = arith.constant 0 : index
    %c0_56 = arith.constant 0 : index
    %94 = vector.load %arg5[%c0_55, %c0_56] : memref<16x128xf32, #tpu.memory_space<vmem>>, vector<16x128xf32>
    %95 = arith.addf %93, %94 : vector<16x128xf32>
    %c0_57 = arith.constant 0 : index
    %c0_58 = arith.constant 0 : index
    %c0_59 = arith.constant 0 : index
    %96 = vector.load %arg6[%c0_57, %c0_58, %c0_59] : memref<1x16x128xf32, #tpu.memory_space<vmem>>, vector<1x16x128xf32>
    %97 = vector.shape_cast %96 : vector<1x16x128xf32> to vector<16x128xf32>
    %98 = vector.shape_cast %95 : vector<16x128xf32> to vector<1x16x128xf32>
    tpu.vector_store %arg6[%c0_57, %c0_58, %c0_59], %98 {strides = array<i32>} : memref<1x16x128xf32, #tpu.memory_space<vmem>>, vector<1x16x128xf32>,
    return
  }
  func.func @transform_1(%arg0: i32, %arg1: i32, %arg2: memref<128xi32, #tpu.memory_space<smem>>, %arg3: memref<1xi32, #tpu.memory_space<smem>>) -> (i32, i32) {
    %c0_i32 = arith.constant 0 : i32
    %c0_i32_0 = arith.constant 0 : i32
    return %arg0, %c0_i32 : i32, i32
  }
  func.func @transform_2(%arg0: i32, %arg1: i32, %arg2: memref<128xi32, #tpu.memory_space<smem>>, %arg3: memref<1xi32, #tpu.memory_space<smem>>) -> (i32, i32, i32) {
    %c0_i32 = arith.constant 0 : i32
    %c0_i32_0 = arith.constant 0 : i32
    return %arg1, %arg0, %c0_i32 : i32, i32, i32
  }
}

</mosaic_0001>

<bundles_post_ra>
// kernel: tpu_custom_call.1
= control target key start
LH: loop header
LB: loop body
LE: loop exit
PB: predicated region body
PF: predicated region fallthrough
CT: control target
= control target key end

     0   :  { %s2932_s0 = inlined_call_operand.vmem [shape: s32[128], index: 0, kind: input, shape index: {}]   ;;  %s2933_s1 = inlined_call_operand.<no memory space> [shape: s32[1], index: 1, kind: input, shape index: {}]   ;;  %s2934_s2 = inlined_call_operand.hbm [shape: f32[256,128], index: 2, kind: input, shape index: {}]   ;;  %s2935_s3 = inlined_call_operand.hbm [shape: f32[32,128], index: 3, kind: input, shape index: {}]   ;;  %s2936_s4 = inlined_call_operand.hbm [shape: f32[4,32,128], index: 4, kind: output, shape index: {}]  }
   0x1   :  { %2950 = sst [smem:[#allocation93_spill]] %s2935_s3  ;;  %s9_s17 = sshll.u32 %s2932_s0, 4  ;;  %s10_s17 = int_to_ptr.vmem [resolvable:$true] %s9_s17 }
   0x2   :  { %2951 = sst [smem:[#allocation94_spill]] %s2936_s4  ;;  %s1244_s18 = scalar_lea.vmem %s10_s17, 16 }
   0x3   :  { %p1245_p0 = scmp.ne.s32.totalorder %s10_s17, %s1244_s18  ;;  %p1249_p1 = scmp.lt.s32.totalorder %s10_s17, %s10_s17 }
   0x4   :  { %p1250_p2 = scmp.lt.s32.totalorder %s1244_s18, %s1244_s18 }
   0x6   :  { %p1251_p3 = por %p1250_p2, %p1249_p1 }
   0x8   :  { %p1252_p4 = pnand %p1251_p3, %p1245_p0 }
   0xa   :  { %1255 = shalt.err (!%p1252_p4)  }
   0xb   :  { %s2114_s1 = smov [#allocation5]  }
   0xc   :  { %12 = dma.vmem_to_smem %s10_s17, 16, %s2114_s1, [#allocation4] }
   0xd   :  { %2058 = dma.done.wait [#allocation4], 16 }
   0xe   :  { %2059 = vsyncadd [#allocation4], 4294967280 }
   0xf   :  { %15 = sfence }
  0x10   :  { %16 = vsyncpa [#allocation8], 0 }
  0x11   :  { %18 = vsyncpa [#allocation8 + $0x1], 0 }
  0x12   :  { %19 = vsyncpa [#allocation9], 0 }
  0x13   :  { %21 = vsyncpa [#allocation9 + $0x1], 0  ;;  %s2151_s19 = smov 0   ;;  %s2153_s0 = smov 0  }
  0x14   :  { %s2155_s20 = smov 0   ;;  %s2157_s21 = smov 0  }
  0x15   :  { %s2159_s22 = smov 0   ;;  %s2161_s23 = smov 0  }
  0x16   :  { %s2163_s24 = smov 0   ;;  %s2165_s25 = smov 0  }
  0x17   :  { %s2167_s26 = smov 0   ;;  %s2169_s27 = smov 0  }
  0x18   :  { %s2171_s28 = smov 0  }
  0x19 LB: > { %2952 = sst [smem:[#allocation81_spill]] %s2072_s19  ;;  %s1048_s29 = sadd.s32 4294967295, %s2112_s28   ;;  %s2112_s28 = sphi %s2171_s28, %s27_s28   ;;  %s2108_s27 = sphi %s2169_s27, %s2985_s27   ;;  %s2104_s26 = sphi %s2167_s26, %s2984_s26   ;;  %s2100_s25 = sphi %s2165_s25, %s2983_s25   ;;  %s2096_s24 = sphi %s2163_s24, %s2982_s24   ;;  %s2092_s23 = sphi %s2161_s23, %s2981_s23   ;;  %s2088_s22 = sphi %s2159_s22, %s2980_s22   ;;  %s2084_s21 = sphi %s2157_s21, %s2979_s21   ;;  %s2080_s20 = sphi %s2155_s20, %s2978_s20   ;;  %s2076_s0 = sphi %s2153_s0, %s2987_s0   ;;  %s2072_s19 = sphi %s2151_s19, %s2986_s19  }
  0x1a   : > { %2953 = sst [smem:[#allocation82_spill]] %s2080_s20  ;;  %s1049_s30 = sadd.s32 4294967294, %s2112_s28  }
  0x1b   : > { %2954 = sst [smem:[#allocation83_spill]] %s2088_s22  ;;  %s36_s5 = sadd.s32 1, %s2104_s26 }
  0x1c   : > { %2955 = sst [smem:[#allocation84_spill]] %s2092_s23  ;;  %s39_s6 = sadd.s32 1, %s2108_s27 }
  0x1d   : > { %2956 = sst [smem:[#allocation85_spill]] %s2104_s26  ;;  %p37_p5 = scmp.ge.s32.totalorder %s36_s5, 4 }
  0x1e   : > { %2957 = sst [smem:[#allocation86_spill]] %s2108_s27  ;;  %s46_s7 = sadd.s32 1, %s2092_s23 }
  0x1f   : > { %2958 = sst [smem:[#allocation87_spill]] %s2112_s28  ;;  %p53_p6 = scmp.ne.s32.totalorder %s2092_s23, %s2088_s22 }
  0x20   : > { %p54_p7 = scmp.eq.s32.totalorder %s2112_s28, 0  ;;  %s2989_s5 = smov (%p37_p5, %s36_s5), 0 }
  0x21   : > { %2959 = sst [smem:[#allocation88_spill]] %s2989_s5  ;;  %s2991_s6 = smov (!%p37_p5, %s39_s6), %s2108_s27 }
  0x22   : > { %p2215_p8 = por %p54_p7, %p53_p6  ;;  %p59_p9 = scmp.ne.s32.totalorder %s2088_s22, %s2084_s21 }
  0x23   : > { %p41_p10 = scmp.ge.s32.totalorder %s2991_s6, 2  ;;  %p60_p11 = scmp.eq.s32.totalorder %s1048_s29, 0 }
  0x24   : > { %s69_s9 = ssub.s32 %s2104_s26, %s2989_s5  ;;  %s74_s10 = sadd.s32 1, %s2080_s20 }
  0x25   : > { %s2993_s6 = smov (%p41_p10, %s2991_s6), 0  ;;  %p2225_p12 = por %p60_p11, %p59_p9 }
  0x26   : > { %2961 = sst [smem:[#allocation89_spill]] %s2993_s6  ;;  %p84_p13 = scmp.ne.s32.totalorder %s2080_s20, %s2076_s0 }
  0x27   : > { %s43_s12 = ssub.s32 %s2108_s27, %s2993_s6  ;;  %p85_p0 = scmp.eq.s32.totalorder %s1048_s29, 7 }
  0x28   : > { %p44_p1 = scmp.eq.s32.totalorder %s43_s12, 0  ;;  %s71_s13 = sor.u32 %s69_s9, %s43_s12 }
  0x29   : > { %p72_p2 = scmp.eq.s32.totalorder %s71_s13, 0  ;;  %p2233_p3 = por %p85_p0, %p84_p13 }
  0x2a   : > { %s2238_s15 = scalar_select %p44_p1, %s2092_s23, %s46_s7  }
  0x2b   : > { %s2241_s16 = scalar_select %p72_p2, %s2080_s20, %s74_s10  }
  0x2c   : > { %2964 = sst [smem:[#allocation90_spill]] %s2238_s15  ;;  %p90_p4 = scmp.ne.s32.totalorder %s2076_s0, %s2072_s19 }
  0x2d   : > { %2965 = sst [smem:[#allocation91_spill]] %s2241_s16  ;;  %p91_p5 = scmp.eq.s32.totalorder %s1049_s30, 7 }
  0x2e   : > { %p1149_p6 = scmp.lt.s32.totalorder %s2112_s28, 8  ;;  %s111_s18 = sand.u32 1, %s2092_s23  }
  0x2f   : > { %p2246_p7 = por %p91_p5, %p90_p4  ;;  %s1052_s1 = sshll.u32 %s111_s18, 4 }
  0x30   : > { %s1136_s21 = sshll.u32 %s2108_s27, 8  ;;  %s2968_s3 = sld [smem:[#allocation93_spill]] }
  0x31   : > { %s2966_s17 = scalar_select %p2246_p7, 1, 0 }
  0x32   : > { %s115_s13 = scalar_lea.vmem [#allocation7], %s1052_s1  ;;  %p2257_p9 = pnand %p1149_p6, %p2215_p8 }
  0x33   : > { %2967 = sst [smem:[#allocation92_spill]] %s2966_s17  ;;  %s122_s6 = sshll.u32 %s115_s13, 4  ;;  %s123_s6 = int_to_ptr.vmem [resolvable:$true] %s122_s6 }
  0x34   : > { %p1055_p10 = scmp.ge.s32.totalorder %s2112_s28, 1  ;;  %s112_s30 = scalar_lea.sflag [#allocation8], %s111_s18 }
  0x35   : > { %p1258_p11 = pneg %p2257_p9  ;;  %s1269_s10 = scalar_lea.vmem %s123_s6, 256 }
  0x36   : > { %s121_s12 = scalar_lea.hbm %s2968_s3, %s1136_s21  ;;  %p1270_p13 = scmp.ne.s32.totalorder %s123_s6, %s1269_s10 }
  0x37   : > { %s2115_s5 = smov [#allocation7]  }
  0x38   : > { %p1272_p0 = pnand %p1270_p13, %p1258_p11  ;;  %s1274_s29 = sshll.u32 %s2115_s5, 4  ;;  %s1275_s29 = int_to_ptr.vmem [resolvable:$false] %s1274_s29 }
  0x39   : > { %s1276_s1 = scalar_lea.vmem %s1275_s29, 512  ;;  %p1277_p2 = scmp.lt.s32.totalorder %s123_s6, %s1275_s29 }
  0x3a   : > { %p1273_p1 = pneg %p1272_p0  ;;  %p1278_p4 = scmp.lt.s32.totalorder %s1276_s1, %s1269_s10 }
  0x3c   : > { %p1279_p5 = por %p1278_p4, %p1277_p2 }
  0x3e   : > { %p1280_p8 = pnand %p1279_p5, %p1273_p1 }
  0x40   : > { %1283 = shalt.err (!%p1280_p8)
}
  0x41   : > { %s2116_s8 = smov 128   ;;  %s2117_s18 = smov 8  }
  0x42   : > { %1144 = dma.hbm_to_vmem [thread:$0]  (!%p2257_p9), %s121_s12, 256, %s123_s6, %s112_s30, %s2116_s8, %s2116_s8, %s2117_s18  }
  0x43   : > { %p130_p6 = scmp.lt.s32.totalorder %s2112_s28, 9 }
  0x45   : > { %p131_p11 = pnand %p1055_p10, %p130_p6 }
  0x46   : > { %s136_s5 = sand.u32 (!%p131_p11), 1, %s2088_s22  }
  0x47   : > { %134 = sbr.rel (%p131_p11) target bundleno = 775 (0x307), region = 24  ;;  %s2270_s21 = sshll.u32 (!%p131_p11), %s136_s5, 4 }
  0x48   : > { %s137_s9 = scalar_lea.sflag (!%p131_p11), [#allocation8], %s136_s5 }
  0x4c   : > { %2061 = dma.done.wait (%p2225_p12), %s137_s9, 256  }
  0x4d   : > { %2063 = vsyncadd (%p2225_p12), %s137_s9, 4294967040  ;;  %s2939_s6 = sand.u32 1, %s2076_s0   ;;  %s1058_s12 = sshll.u32 %s2096_s24, 5 }
  0x4e   : > { %s1057_s7 = sshll.u32 %s2939_s6, 4  ;;  %s1059_s30 = sshll.u32 %s2100_s25, 4 }
  0x4f   : > { %s2282_s10 = sadd.s32 %s1059_s30, %s1058_s12  ;;  %p164_p9 = scmp.lt.s32.totalorder %s2096_s24, 0 }
  0x50   : > { %s165_s29 = ssub.s32 0, %s2096_s24  ;;  %s2289_s18 = scalar_lea.vmem [#allocation10], %s1057_s7 }
  0x51   : > { %s1060_s1 = smin.u32 %s2096_s24, %s165_s29  ;;  %p1061_p12 = scmp.ne.s32.totalorder %s2096_s24, 0 }
  0x52   : > { %s167_s8 = sand.u32 1, %s1060_s1   ;;  %s174_s5 = sld [smem:[#allocation5 + %s2282_s10]] (!%p1061_p12) }
  0x53   : > { %s168_s11 = ssub.s32 0, %s167_s8  ;;  %173 = sbr.rel (%p1061_p12) target bundleno = 412 (0x19c), region = 32 }
  0x54   : > { %s2995_s11 = smov (!%p164_p9, %s168_s11), %s167_s8  ;;  %s191_s29 = sadd.s32 (!%p1061_p12), 1, %s2282_s10 }
  0x55   : > { %s1063_s9 = sshll.u32 (!%p1061_p12), %s2995_s11, 4  ;;  %s2300_s7 = sld [smem:[#allocation5 + %s191_s29]] (!%p1061_p12) }
  0x56   : > { %s2294_s12 = scalar_lea.vmem (!%p1061_p12), [#allocation2], %s1063_s9  ;;  %s208_s8 = sadd.s32 (!%p1061_p12), 2, %s2282_s10 }
  0x57   : > { %s187_s30 = sshll.u32 (!%p1061_p12), %s2294_s12, 4  ;;  %s848_s1 = scalar_lea.vmem (!%p1061_p12), %s2294_s12, 1 [#allocation2]  ;;  %s2298_s30 = int_to_ptr.vmem [resolvable:$true] %s187_s30 }
  0x58   : > { %s204_s6 = sshll.u32 %s848_s1, 4  ;;  %s2304_s13 = sld [smem:[#allocation5 + %s208_s8]]  ;;  %s2306_s6 = int_to_ptr.vmem [resolvable:$true] %s204_s6 }
  0x59   : > { %s1062_s3 = sshll.u32 %s174_s5, 4  ;;  %s853_s15 = scalar_lea.vmem %s2294_s12, 2 [#allocation2] }
  0x5a   : > { %s176_s26 = scalar_lea.hbm %s2934_s2, %s1062_s3  ;;  %s2313_s23 = scalar_lea.sflag [#allocation3], %s2995_s11 }
  0x5b   : > { %s1284_s22 = scalar_lea.hbm %s176_s26, 16  ;;  %s2318_s20 = scalar_lea.hbm %s2934_s2, 4096 }
  0x5c   : > { %p1285_p10 = scmp.ne.s32.totalorder %s176_s26, %s1284_s22  ;;  %p1287_p13 = scmp.lt.s32.totalorder %s176_s26, %s2934_s2 }
  0x5d   : > { %p1288_p0 = scmp.lt.s32.totalorder %s2318_s20, %s1284_s22 }
  0x5f   : > { %p1289_p1 = por %p1288_p0, %p1287_p13 }
  0x61   : > { %p1290_p2 = pnand %p1289_p1, %p1285_p10 }
  0x63   : > { %1293 = shalt.err (!%p1290_p2)  }
  0x64   : > { %s1294_s3 = scalar_lea.vmem %s2298_s30, 16  ;;  %s2118_s27 = smov [#allocation2]  }
  0x65   : > { %p1295_p4 = scmp.ne.s32.totalorder %s2298_s30, %s1294_s3  ;;  %s1296_s5 = sshll.u32 %s2118_s27, 4  ;;  %s2326_s5 = int_to_ptr.vmem [resolvable:$false] %s1296_s5 }
  0x66   : > { %s2329_s16 = scalar_lea.vmem %s2326_s5, 512  ;;  %p1299_p5 = scmp.lt.s32.totalorder %s2298_s30, %s2326_s5 }
  0x67   : > { %p1300_p8 = scmp.lt.s32.totalorder %s2329_s16, %s1294_s3 }
  0x69   : > { %p1301_p6 = por %p1300_p8, %p1299_p5 }
  0x6b   : > { %p1302_p11 = pnand %p1301_p6, %p1295_p4 }
  0x6d   : > { %1305 = shalt.err (!%p1302_p11)  }
  0x6e   : > { %190 = dma.hbm_to_vmem [thread:$0]  %s176_s26, 16, %s2298_s30, %s2313_s23 }
  0x6f   : > { %s1064_s22 = sshll.u32 %s2300_s7, 4  ;;  %s221_s9 = sshll.u32 %s853_s15, 4  ;;  %s2340_s9 = int_to_ptr.vmem [resolvable:$true] %s221_s9 }
  0x70   : > { %s194_s8 = scalar_lea.hbm %s2934_s2, %s1064_s22 }
  0x71   : > { %s1306_s27 = scalar_lea.hbm %s194_s8, 16  ;;  %p1309_p12 = scmp.lt.s32.totalorder %s194_s8, %s2934_s2 }
  0x72   : > { %p1307_p9 = scmp.ne.s32.totalorder %s194_s8, %s1306_s27  ;;  %p1310_p10 = scmp.lt.s32.totalorder %s2318_s20, %s1306_s27 }
  0x74   : > { %p1311_p13 = por %p1310_p10, %p1309_p12 }
  0x76   : > { %p1312_p0 = pnand %p1311_p13, %p1307_p9 }
  0x78   : > { %1315 = shalt.err (!%p1312_p0)  }
  0x79   : > { %s1316_s26 = scalar_lea.vmem %s2306_s6, 16  ;;  %p1321_p2 = scmp.lt.s32.totalorder %s2306_s6, %s2326_s5 }
  0x7a   : > { %p1317_p1 = scmp.ne.s32.totalorder %s2306_s6, %s1316_s26  ;;  %p1322_p4 = scmp.lt.s32.totalorder %s2329_s16, %s1316_s26 }
  0x7c   : > { %p1323_p5 = por %p1322_p4, %p1321_p2 }
  0x7e   : > { %p1324_p8 = pnand %p1323_p5, %p1317_p1 }
  0x80   : > { %1327 = shalt.err (!%p1324_p8)  }
  0x81   : > { %207 = dma.hbm_to_vmem [thread:$0]  %s194_s8, 16, %s2306_s6, %s2313_s23 }
  0x82   : > { %s1066_s15 = sshll.u32 %s2304_s13, 4  ;;  %s225_s17 = sadd.s32 3, %s2282_s10 }
  0x83   : > { %s211_s22 = scalar_lea.hbm %s2934_s2, %s1066_s15  ;;  %s226_s29 = sld [smem:[#allocation5 + %s225_s17]] }
  0x84   : > { %s1328_s1 = scalar_lea.hbm %s211_s22, 16  ;;  %p1331_p11 = scmp.lt.s32.totalorder %s211_s22, %s2934_s2 }
  0x85   : > { %p1329_p6 = scmp.ne.s32.totalorder %s211_s22, %s1328_s1  ;;  %p1332_p9 = scmp.lt.s32.totalorder %s2318_s20, %s1328_s1 }
  0x87   : > { %p1333_p12 = por %p1332_p9, %p1331_p11 }
  0x89   : > { %p1334_p10 = pnand %p1333_p12, %p1329_p6 }
  0x8b   : > { %1337 = shalt.err (!%p1334_p10)  }
  0x8c   : > { %s1338_s13 = scalar_lea.vmem %s2340_s9, 16  ;;  %p1343_p0 = scmp.lt.s32.totalorder %s2340_s9, %s2326_s5 }
  0x8d   : > { %p1339_p13 = scmp.ne.s32.totalorder %s2340_s9, %s1338_s13  ;;  %p1344_p1 = scmp.lt.s32.totalorder %s2329_s16, %s1338_s13 }
  0x8f   : > { %p1345_p2 = por %p1344_p1, %p1343_p0 }
  0x91   : > { %p1346_p4 = pnand %p1345_p2, %p1339_p13 }
  0x93   : > { %1349 = shalt.err (!%p1346_p4)  }
  0x94   : > { %224 = dma.hbm_to_vmem [thread:$0]  %s211_s22, 16, %s2340_s9, %s2313_s23 }
  0x95   : > { %s858_s6 = scalar_lea.vmem %s2294_s12, 3 [#allocation2]  ;;  %s242_s8 = sadd.s32 4, %s2282_s10 }
  0x96   : > { %s238_s26 = sshll.u32 %s858_s6, 4  ;;  %s243_s15 = sld [smem:[#allocation5 + %s242_s8]]  ;;  %s239_s26 = int_to_ptr.vmem [resolvable:$true] %s238_s26 }
  0x97   : > { %s863_s17 = scalar_lea.vmem %s2294_s12, 4 [#allocation2]  ;;  %s259_s7 = sadd.s32 5, %s2282_s10 }
  0x98   : > { %s255_s30 = sshll.u32 %s863_s17, 4  ;;  %s1068_s1 = sshll.u32 %s226_s29, 4  ;;  %s2373_s30 = int_to_ptr.vmem [resolvable:$true] %s255_s30 }
  0x99   : > { %s228_s13 = scalar_lea.hbm %s2934_s2, %s1068_s1  ;;  %s2378_s19 = sld [smem:[#allocation5 + %s259_s7]] }
  0x9a   : > { %s1350_s28 = scalar_lea.hbm %s228_s13, 16  ;;  %p1353_p8 = scmp.lt.s32.totalorder %s228_s13, %s2934_s2 }
  0x9b   : > { %p1351_p5 = scmp.ne.s32.totalorder %s228_s13, %s1350_s28  ;;  %p1354_p6 = scmp.lt.s32.totalorder %s2318_s20, %s1350_s28 }
  0x9d   : > { %p1355_p11 = por %p1354_p6, %p1353_p8 }
  0x9f   : > { %p1356_p9 = pnand %p1355_p11, %p1351_p5 }
  0xa1   : > { %1359 = shalt.err (!%p1356_p9)  }
  0xa2   : > { %s1360_s6 = scalar_lea.vmem %s239_s26, 16  ;;  %p1365_p10 = scmp.lt.s32.totalorder %s239_s26, %s2326_s5 }
  0xa3   : > { %p1361_p12 = scmp.ne.s32.totalorder %s239_s26, %s1360_s6  ;;  %p1366_p13 = scmp.lt.s32.totalorder %s2329_s16, %s1360_s6 }
  0xa5   : > { %p1367_p0 = por %p1366_p13, %p1365_p10 }
  0xa7   : > { %p1368_p1 = pnand %p1367_p0, %p1361_p12 }
  0xa9   : > { %1371 = shalt.err (!%p1368_p1)  }
  0xaa   : > { %241 = dma.hbm_to_vmem [thread:$0]  %s228_s13, 16, %s239_s26, %s2313_s23 }
  0xab   : > { %s1070_s29 = sshll.u32 %s243_s15, 4  ;;  %s868_s8 = scalar_lea.vmem %s2294_s12, 5 [#allocation2] }
  0xac   : > { %s245_s7 = scalar_lea.hbm %s2934_s2, %s1070_s29  ;;  %s272_s1 = sshll.u32 %s868_s8, 4  ;;  %s273_s1 = int_to_ptr.vmem [resolvable:$true] %s272_s1 }
  0xad   : > { %s1372_s27 = scalar_lea.hbm %s245_s7, 16  ;;  %p1375_p4 = scmp.lt.s32.totalorder %s245_s7, %s2934_s2 }
  0xae   : > { %p1373_p2 = scmp.ne.s32.totalorder %s245_s7, %s1372_s27  ;;  %p1376_p5 = scmp.lt.s32.totalorder %s2318_s20, %s1372_s27 }
  0xb0   : > { %p1377_p8 = por %p1376_p5, %p1375_p4 }
  0xb2   : > { %p1378_p6 = pnand %p1377_p8, %p1373_p2 }
  0xb4   : > { %1381 = shalt.err (!%p1378_p6)  }
  0xb5   : > { %s1382_s26 = scalar_lea.vmem %s2373_s30, 16  ;;  %p1387_p9 = scmp.lt.s32.totalorder %s2373_s30, %s2326_s5 }
  0xb6   : > { %p1383_p11 = scmp.ne.s32.totalorder %s2373_s30, %s1382_s26  ;;  %p1388_p12 = scmp.lt.s32.totalorder %s2329_s16, %s1382_s26 }
  0xb8   : > { %p1389_p10 = por %p1388_p12, %p1387_p9 }
  0xba   : > { %p1390_p13 = pnand %p1389_p10, %p1383_p11 }
  0xbc   : > { %1393 = shalt.err (!%p1390_p13)  }
  0xbd   : > { %258 = dma.hbm_to_vmem [thread:$0]  %s245_s7, 16, %s2373_s30, %s2313_s23 }
  0xbe   : > { %s276_s15 = sadd.s32 6, %s2282_s10  ;;  %s1072_s13 = sshll.u32 %s2378_s19, 4 }
  0xbf   : > { %s277_s22 = sld [smem:[#allocation5 + %s276_s15]]  ;;  %s262_s8 = scalar_lea.hbm %s2934_s2, %s1072_s13 }
  0xc0   : > { %s873_s17 = scalar_lea.vmem %s2294_s12, 6 [#allocation2]  ;;  %s1394_s28 = scalar_lea.hbm %s262_s8, 16 }
  0xc1   : > { %p1395_p0 = scmp.ne.s32.totalorder %s262_s8, %s1394_s28  ;;  %p1397_p1 = scmp.lt.s32.totalorder %s262_s8, %s2934_s2 }
  0xc2   : > { %p1398_p2 = scmp.lt.s32.totalorder %s2318_s20, %s1394_s28 }
  0xc4   : > { %p1399_p4 = por %p1398_p2, %p1397_p1 }
  0xc6   : > { %p1400_p5 = pnand %p1399_p4, %p1395_p0 }
  0xc8   : > { %1403 = shalt.err (!%p1400_p5)  }
  0xc9   : > { %s1404_s30 = scalar_lea.vmem %s273_s1, 16  ;;  %p1409_p6 = scmp.lt.s32.totalorder %s273_s1, %s2326_s5 }
  0xca   : > { %p1405_p8 = scmp.ne.s32.totalorder %s273_s1, %s1404_s30  ;;  %p1410_p11 = scmp.lt.s32.totalorder %s2329_s16, %s1404_s30 }
  0xcc   : > { %p1411_p9 = por %p1410_p11, %p1409_p6 }
  0xce   : > { %p1412_p12 = pnand %p1411_p9, %p1405_p8 }
  0xd0   : > { %1415 = shalt.err (!%p1412_p12)  }
  0xd1   : > { %275 = dma.hbm_to_vmem [thread:$0]  %s262_s8, 16, %s273_s1, %s2313_s23 }
  0xd2   : > { %s289_s19 = sshll.u32 %s873_s17, 4  ;;  %s293_s7 = sadd.s32 7, %s2282_s10  ;;  %s290_s19 = int_to_ptr.vmem [resolvable:$true] %s289_s19 }
  0xd3   : > { %s294_s9 = sld [smem:[#allocation5 + %s293_s7]]  ;;  %s878_s26 = scalar_lea.vmem %s2294_s12, 7 [#allocation2] }
  0xd4   : > { %s310_s15 = sadd.s32 8, %s2282_s10  ;;  %s1074_s13 = sshll.u32 %s277_s22, 4 }
  0xd5   : > { %s306_s6 = sshll.u32 %s878_s26, 4  ;;  %s279_s27 = scalar_lea.hbm %s2934_s2, %s1074_s13  ;;  %s2421_s6 = int_to_ptr.vmem [resolvable:$true] %s306_s6 }
  0xd6   : > { %s1416_s3 = scalar_lea.hbm %s279_s27, 16  ;;  %p1419_p13 = scmp.lt.s32.totalorder %s279_s27, %s2934_s2 }
  0xd7   : > { %p1417_p10 = scmp.ne.s32.totalorder %s279_s27, %s1416_s3  ;;  %p1420_p0 = scmp.lt.s32.totalorder %s2318_s20, %s1416_s3 }
  0xd9   : > { %p1421_p1 = por %p1420_p0, %p1419_p13 }
  0xdb   : > { %p1422_p2 = pnand %p1421_p1, %p1417_p10 }
  0xdd   : > { %1425 = shalt.err (!%p1422_p2)  }
  0xde   : > { %s1426_s1 = scalar_lea.vmem %s290_s19, 16  ;;  %p1431_p5 = scmp.lt.s32.totalorder %s290_s19, %s2326_s5 }
  0xdf   : > { %p1427_p4 = scmp.ne.s32.totalorder %s290_s19, %s1426_s1  ;;  %p1432_p8 = scmp.lt.s32.totalorder %s2329_s16, %s1426_s1 }
  0xe1   : > { %p1433_p6 = por %p1432_p8, %p1431_p5 }
  0xe3   : > { %p1434_p11 = pnand %p1433_p6, %p1427_p4 }
  0xe5   : > { %1437 = shalt.err (!%p1434_p11)  }
  0xe6   : > { %292 = dma.hbm_to_vmem [thread:$0]  %s279_s27, 16, %s290_s19, %s2313_s23 }
  0xe7   : > { %s311_s22 = sld [smem:[#allocation5 + %s310_s15]]  ;;  %s883_s4 = scalar_lea.vmem %s2294_s12, 8 [#allocation2] }
  0xe8   : > { %s1076_s8 = sshll.u32 %s294_s9, 4  ;;  %s323_s17 = sshll.u32 %s883_s4, 4  ;;  %s2434_s17 = int_to_ptr.vmem [resolvable:$true] %s323_s17 }
  0xe9   : > { %s296_s13 = scalar_lea.hbm %s2934_s2, %s1076_s8 }
  0xea   : > { %s1438_s29 = scalar_lea.hbm %s296_s13, 16  ;;  %p1441_p12 = scmp.lt.s32.totalorder %s296_s13, %s2934_s2 }
  0xeb   : > { %p1439_p9 = scmp.ne.s32.totalorder %s296_s13, %s1438_s29  ;;  %p1442_p10 = scmp.lt.s32.totalorder %s2318_s20, %s1438_s29 }
  0xed   : > { %p1443_p13 = por %p1442_p10, %p1441_p12 }
  0xef   : > { %p1444_p0 = pnand %p1443_p13, %p1439_p9 }
  0xf1   : > { %1447 = shalt.err (!%p1444_p0)  }
  0xf2   : > { %s1448_s19 = scalar_lea.vmem %s2421_s6, 16  ;;  %p1453_p2 = scmp.lt.s32.totalorder %s2421_s6, %s2326_s5 }
  0xf3   : > { %p1449_p1 = scmp.ne.s32.totalorder %s2421_s6, %s1448_s19  ;;  %p1454_p4 = scmp.lt.s32.totalorder %s2329_s16, %s1448_s19 }
  0xf5   : > { %p1455_p5 = por %p1454_p4, %p1453_p2 }
  0xf7   : > { %p1456_p8 = pnand %p1455_p5, %p1449_p1 }
  0xf9   : > { %1459 = shalt.err (!%p1456_p8)  }
  0xfa   : > { %309 = dma.hbm_to_vmem [thread:$0]  %s296_s13, 16, %s2421_s6, %s2313_s23 }
  0xfb   : > { %s327_s9 = sadd.s32 9, %s2282_s10  ;;  %s888_s15 = scalar_lea.vmem %s2294_s12, 9 [#allocation2] }
  0xfc   : > { %s328_s27 = sld [smem:[#allocation5 + %s327_s9]]  ;;  %s340_s30 = sshll.u32 %s888_s15, 4  ;;  %s2449_s30 = int_to_ptr.vmem [resolvable:$true] %s340_s30 }
  0xfd   : > { %s1078_s1 = sshll.u32 %s311_s22, 4  ;;  %s344_s26 = sadd.s32 10, %s2282_s10 }
  0xfe   : > { %s313_s7 = scalar_lea.hbm %s2934_s2, %s1078_s1 }
  0xff   : > { %s1460_s29 = scalar_lea.hbm %s313_s7, 16  ;;  %p1463_p11 = scmp.lt.s32.totalorder %s313_s7, %s2934_s2 }
 0x100   : > { %p1461_p6 = scmp.ne.s32.totalorder %s313_s7, %s1460_s29  ;;  %p1464_p9 = scmp.lt.s32.totalorder %s2318_s20, %s1460_s29 }
 0x102   : > { %p1465_p12 = por %p1464_p9, %p1463_p11 }
 0x104   : > { %p1466_p10 = pnand %p1465_p12, %p1461_p6 }
 0x106   : > { %1469 = shalt.err (!%p1466_p10)  }
 0x107   : > { %s1470_s6 = scalar_lea.vmem %s2434_s17, 16  ;;  %p1475_p0 = scmp.lt.s32.totalorder %s2434_s17, %s2326_s5 }
 0x108   : > { %p1471_p13 = scmp.ne.s32.totalorder %s2434_s17, %s1470_s6  ;;  %p1476_p1 = scmp.lt.s32.totalorder %s2329_s16, %s1470_s6 }
 0x10a   : > { %p1477_p2 = por %p1476_p1, %p1475_p0 }
 0x10c   : > { %p1478_p4 = pnand %p1477_p2, %p1471_p13 }
 0x10e   : > { %1481 = shalt.err (!%p1478_p4)  }
 0x10f   : > { %326 = dma.hbm_to_vmem [thread:$0]  %s313_s7, 16, %s2434_s17, %s2313_s23 }
 0x110   : > { %s345_s22 = sld [smem:[#allocation5 + %s344_s26]]  ;;  %s893_s13 = scalar_lea.vmem %s2294_s12, 10 [#allocation2] }
 0x111   : > { %s357_s19 = sshll.u32 %s893_s13, 4  ;;  %s361_s9 = sadd.s32 11, %s2282_s10  ;;  %s2468_s19 = int_to_ptr.vmem [resolvable:$true] %s357_s19 }
 0x112   : > { %s1080_s15 = sshll.u32 %s328_s27, 4  ;;  %s2473_s29 = sld [smem:[#allocation5 + %s361_s9]] }
 0x113   : > { %s330_s8 = scalar_lea.hbm %s2934_s2, %s1080_s15 }
 0x114   : > { %s1482_s28 = scalar_lea.hbm %s330_s8, 16  ;;  %p1485_p8 = scmp.lt.s32.totalorder %s330_s8, %s2934_s2 }
 0x115   : > { %p1483_p5 = scmp.ne.s32.totalorder %s330_s8, %s1482_s28  ;;  %p1486_p6 = scmp.lt.s32.totalorder %s2318_s20, %s1482_s28 }
 0x117   : > { %p1487_p11 = por %p1486_p6, %p1485_p8 }
 0x119   : > { %p1488_p9 = pnand %p1487_p11, %p1483_p5 }
 0x11b   : > { %1491 = shalt.err (!%p1488_p9)  }
 0x11c   : > { %s1492_s17 = scalar_lea.vmem %s2449_s30, 16  ;;  %p1497_p10 = scmp.lt.s32.totalorder %s2449_s30, %s2326_s5 }
 0x11d   : > { %p1493_p12 = scmp.ne.s32.totalorder %s2449_s30, %s1492_s17  ;;  %p1498_p13 = scmp.lt.s32.totalorder %s2329_s16, %s1492_s17 }
 0x11f   : > { %p1499_p0 = por %p1498_p13, %p1497_p10 }
 0x121   : > { %p1500_p1 = pnand %p1499_p0, %p1493_p12 }
 0x123   : > { %1503 = shalt.err (!%p1500_p1)  }
 0x124   : > { %343 = dma.hbm_to_vmem [thread:$0]  %s330_s8, 16, %s2449_s30, %s2313_s23 }
 0x125   : > { %s898_s27 = scalar_lea.vmem %s2294_s12, 11 [#allocation2]  ;;  %s378_s7 = sadd.s32 12, %s2282_s10 }
 0x126   : > { %s1082_s26 = sshll.u32 %s345_s22, 4  ;;  %s374_s13 = sshll.u32 %s898_s27, 4  ;;  %s2491_s13 = int_to_ptr.vmem [resolvable:$true] %s374_s13 }
 0x127   : > { %s347_s1 = scalar_lea.hbm %s2934_s2, %s1082_s26 }
 0x128   : > { %s1504_s4 = scalar_lea.hbm %s347_s1, 16  ;;  %p1507_p4 = scmp.lt.s32.totalorder %s347_s1, %s2934_s2 }
 0x129   : > { %p1505_p2 = scmp.ne.s32.totalorder %s347_s1, %s1504_s4  ;;  %p1508_p5 = scmp.lt.s32.totalorder %s2318_s20, %s1504_s4 }
 0x12b   : > { %p1509_p8 = por %p1508_p5, %p1507_p4 }
 0x12d   : > { %p1510_p6 = pnand %p1509_p8, %p1505_p2 }
 0x12f   : > { %1513 = shalt.err (!%p1510_p6)  }
 0x130   : > { %s1514_s30 = scalar_lea.vmem %s2468_s19, 16  ;;  %p1519_p9 = scmp.lt.s32.totalorder %s2468_s19, %s2326_s5 }
 0x131   : > { %p1515_p11 = scmp.ne.s32.totalorder %s2468_s19, %s1514_s30  ;;  %p1520_p12 = scmp.lt.s32.totalorder %s2329_s16, %s1514_s30 }
 0x133   : > { %p1521_p10 = por %p1520_p12, %p1519_p9 }
 0x135   : > { %p1522_p13 = pnand %p1521_p10, %p1515_p11 }
 0x137   : > { %1525 = shalt.err (!%p1522_p13)  }
 0x138   : > { %360 = dma.hbm_to_vmem [thread:$0]  %s347_s1, 16, %s2468_s19, %s2313_s23 }
 0x139   : > { %s1084_s22 = sshll.u32 %s2473_s29, 4  ;;  %s379_s8 = sld [smem:[#allocation5 + %s378_s7]] }
 0x13a   : > { %s364_s27 = scalar_lea.hbm %s2934_s2, %s1084_s22  ;;  %s903_s26 = scalar_lea.vmem %s2294_s12, 12 [#allocation2] }
 0x13b   : > { %s1526_s9 = scalar_lea.hbm %s364_s27, 16  ;;  %p1529_p1 = scmp.lt.s32.totalorder %s364_s27, %s2934_s2 }
 0x13c   : > { %p1527_p0 = scmp.ne.s32.totalorder %s364_s27, %s1526_s9  ;;  %p1530_p2 = scmp.lt.s32.totalorder %s2318_s20, %s1526_s9 }
 0x13e   : > { %p1531_p4 = por %p1530_p2, %p1529_p1 }
 0x140   : > { %p1532_p5 = pnand %p1531_p4, %p1527_p0 }
 0x142   : > { %1535 = shalt.err (!%p1532_p5)  }
 0x143   : > { %s1536_s19 = scalar_lea.vmem %s2491_s13, 16  ;;  %p1541_p6 = scmp.lt.s32.totalorder %s2491_s13, %s2326_s5 }
 0x144   : > { %p1537_p8 = scmp.ne.s32.totalorder %s2491_s13, %s1536_s19  ;;  %p1542_p11 = scmp.lt.s32.totalorder %s2329_s16, %s1536_s19 }
 0x146   : > { %p1543_p9 = por %p1542_p11, %p1541_p6 }
 0x148   : > { %p1544_p12 = pnand %p1543_p9, %p1537_p8 }
 0x14a   : > { %1547 = shalt.err (!%p1544_p12)  }
 0x14b   : > { %377 = dma.hbm_to_vmem [thread:$0]  %s364_s27, 16, %s2491_s13, %s2313_s23 }
 0x14c   : > { %s391_s29 = sshll.u32 %s903_s26, 4  ;;  %s395_s7 = sadd.s32 13, %s2282_s10  ;;  %s392_s29 = int_to_ptr.vmem [resolvable:$true] %s391_s29 }
 0x14d   : > { %s396_s1 = sld [smem:[#allocation5 + %s395_s7]]  ;;  %s908_s28 = scalar_lea.vmem %s2294_s12, 13 [#allocation2] }
 0x14e   : > { %s412_s3 = sadd.s32 14, %s2282_s10  ;;  %s1086_s30 = sshll.u32 %s379_s8, 4 }
 0x14f   : > { %s408_s22 = sshll.u32 %s908_s28, 4  ;;  %s381_s9 = scalar_lea.hbm %s2934_s2, %s1086_s30  ;;  %s2526_s22 = int_to_ptr.vmem [resolvable:$true] %s408_s22 }
 0x150   : > { %s1548_s15 = scalar_lea.hbm %s381_s9, 16  ;;  %p1551_p13 = scmp.lt.s32.totalorder %s381_s9, %s2934_s2 }
 0x151   : > { %p1549_p10 = scmp.ne.s32.totalorder %s381_s9, %s1548_s15  ;;  %p1552_p0 = scmp.lt.s32.totalorder %s2318_s20, %s1548_s15 }
 0x153   : > { %p1553_p1 = por %p1552_p0, %p1551_p13 }
 0x155   : > { %p1554_p2 = pnand %p1553_p1, %p1549_p10 }
 0x157   : > { %1557 = shalt.err (!%p1554_p2)  }
 0x158   : > { %s1558_s13 = scalar_lea.vmem %s392_s29, 16  ;;  %p1563_p5 = scmp.lt.s32.totalorder %s392_s29, %s2326_s5 }
 0x159   : > { %p1559_p4 = scmp.ne.s32.totalorder %s392_s29, %s1558_s13  ;;  %p1564_p8 = scmp.lt.s32.totalorder %s2329_s16, %s1558_s13 }
 0x15b   : > { %p1565_p6 = por %p1564_p8, %p1563_p5 }
 0x15d   : > { %p1566_p11 = pnand %p1565_p6, %p1559_p4 }
 0x15f   : > { %1569 = shalt.err (!%p1566_p11)  }
 0x160   : > { %394 = dma.hbm_to_vmem [thread:$0]  %s381_s9, 16, %s392_s29, %s2313_s23 }
 0x161   : > { %s413_s8 = sld [smem:[#allocation5 + %s412_s3]]  ;;  %s913_s27 = scalar_lea.vmem %s2294_s12, 14 [#allocation2] }
 0x162   : > { %s1088_s26 = sshll.u32 %s396_s1, 4  ;;  %s425_s6 = sshll.u32 %s913_s27, 4  ;;  %s426_s6 = int_to_ptr.vmem [resolvable:$true] %s425_s6 }
 0x163   : > { %s398_s30 = scalar_lea.hbm %s2934_s2, %s1088_s26 }
 0x164   : > { %s1570_s17 = scalar_lea.hbm %s398_s30, 16  ;;  %p1573_p12 = scmp.lt.s32.totalorder %s398_s30, %s2934_s2 }
 0x165   : > { %p1571_p9 = scmp.ne.s32.totalorder %s398_s30, %s1570_s17  ;;  %p1574_p10 = scmp.lt.s32.totalorder %s2318_s20, %s1570_s17 }
 0x167   : > { %p1575_p13 = por %p1574_p10, %p1573_p12 }
 0x169   : > { %p1576_p0 = pnand %p1575_p13, %p1571_p9 }
 0x16b   : > { %1579 = shalt.err (!%p1576_p0)  }
 0x16c   : > { %s1580_s29 = scalar_lea.vmem %s2526_s22, 16  ;;  %p1585_p2 = scmp.lt.s32.totalorder %s2526_s22, %s2326_s5 }
 0x16d   : > { %p1581_p1 = scmp.ne.s32.totalorder %s2526_s22, %s1580_s29  ;;  %p1586_p4 = scmp.lt.s32.totalorder %s2329_s16, %s1580_s29 }
 0x16f   : > { %p1587_p5 = por %p1586_p4, %p1585_p2 }
 0x171   : > { %p1588_p8 = pnand %p1587_p5, %p1581_p1 }
 0x173   : > { %1591 = shalt.err (!%p1588_p8)  }
 0x174   : > { %411 = dma.hbm_to_vmem [thread:$0]  %s398_s30, 16, %s2526_s22, %s2313_s23 }
 0x175   : > { %s429_s1 = sadd.s32 15, %s2282_s10  ;;  %s918_s3 = scalar_lea.vmem %s2294_s12, 15 [#allocation2] }
 0x176   : > { %s430_s9 = sld [smem:[#allocation5 + %s429_s1]]  ;;  %s1090_s19 = sshll.u32 %s413_s8, 4 }
 0x177   : > { %s415_s26 = scalar_lea.hbm %s2934_s2, %s1090_s19  ;;  %s442_s7 = sshll.u32 %s918_s3, 4  ;;  %s443_s7 = int_to_ptr.vmem [resolvable:$true] %s442_s7 }
 0x178   : > { %s1592_s28 = scalar_lea.hbm %s415_s26, 16  ;;  %p1595_p11 = scmp.lt.s32.totalorder %s415_s26, %s2934_s2 }
 0x179   : > { %p1593_p6 = scmp.ne.s32.totalorder %s415_s26, %s1592_s28  ;;  %p1596_p9 = scmp.lt.s32.totalorder %s2318_s20, %s1592_s28 }
 0x17b   : > { %p1597_p12 = por %p1596_p9, %p1595_p11 }
 0x17d   : > { %p1598_p10 = pnand %p1597_p12, %p1593_p6 }
 0x17f   : > { %1601 = shalt.err (!%p1598_p10)  }
 0x180   : > { %s1602_s22 = scalar_lea.vmem %s426_s6, 16  ;;  %p1607_p0 = scmp.lt.s32.totalorder %s426_s6, %s2326_s5 }
 0x181   : > { %p1603_p13 = scmp.ne.s32.totalorder %s426_s6, %s1602_s22  ;;  %p1608_p1 = scmp.lt.s32.totalorder %s2329_s16, %s1602_s22 }
 0x183   : > { %p1609_p2 = por %p1608_p1, %p1607_p0 }
 0x185   : > { %p1610_p4 = pnand %p1609_p2, %p1603_p13 }
 0x187   : > { %1613 = shalt.err (!%p1610_p4)  }
 0x188   : > { %428 = dma.hbm_to_vmem [thread:$0]  %s415_s26, 16, %s426_s6, %s2313_s23 }
 0x189   : > { %s1092_s12 = sshll.u32 %s430_s9, 4 }
 0x18a   : > { %s432_s4 = scalar_lea.hbm %s2934_s2, %s1092_s12 }
 0x18b   : > { %s1614_s29 = scalar_lea.hbm %s432_s4, 16  ;;  %p1617_p8 = scmp.lt.s32.totalorder %s432_s4, %s2934_s2 }
 0x18c   : > { %p1615_p5 = scmp.ne.s32.totalorder %s432_s4, %s1614_s29  ;;  %p1618_p6 = scmp.lt.s32.totalorder %s2318_s20, %s1614_s29 }
 0x18e   : > { %p1619_p11 = por %p1618_p6, %p1617_p8 }
 0x190   : > { %p1620_p9 = pnand %p1619_p11, %p1615_p5 }
 0x192   : > { %1623 = shalt.err (!%p1620_p9)  }
 0x193   : > { %s1624_s19 = scalar_lea.vmem %s443_s7, 16  ;;  %p1629_p10 = scmp.lt.s32.totalorder %s443_s7, %s2326_s5 }
 0x194   : > { %p1625_p12 = scmp.ne.s32.totalorder %s443_s7, %s1624_s19  ;;  %p1630_p13 = scmp.lt.s32.totalorder %s2329_s16, %s1624_s19 }
 0x196   : > { %p1631_p0 = por %p1630_p13, %p1629_p10 }
 0x198   : > { %p1632_p1 = pnand %p1631_p0, %p1625_p12 }
 0x19a   : > { %1635 = shalt.err (!%p1632_p1)  }
 0x19b   : > { %445 = dma.hbm_to_vmem [thread:$0]  %s432_s4, 16, %s443_s7, %s2313_s23 }
 0x19c PF: > { %s446_s6 = sadd.s32 1, %s2096_s24 }
 0x19d   : > { %p1094_p2 = scmp.ge.s32.totalorder %s446_s6, 4 }
 0x19e   : > { %s451_s20 = sadd.s32 (!%p1094_p2), 32, %s2282_s10  ;;  %s452_s9 = ssub.s32 (!%p1094_p2), 1, %s2995_s11 }
 0x19f   : > { %450 = sbr.rel (%p1094_p2) target bundleno = 743 (0x2e7), region = 100  ;;  %s453_s13 = sld [smem:[#allocation5 + %s451_s20]] (!%p1094_p2) }
 0x1a0   : > { %s1096_s27 = sshll.u32 (!%p1094_p2), %s452_s9, 4  ;;  %s470_s23 = sadd.s32 (!%p1094_p2), 33, %s2282_s10 }
 0x1a1   : > { %s2575_s5 = scalar_lea.vmem (!%p1094_p2), [#allocation2], %s1096_s27  ;;  %s2581_s26 = sld [smem:[#allocation5 + %s470_s23]] (!%p1094_p2) }
 0x1a2   : > { %s466_s16 = sshll.u32 (!%p1094_p2), %s2575_s5, 4  ;;  %s928_s7 = scalar_lea.vmem (!%p1094_p2), %s2575_s5, 1 [#allocation2]  ;;  %s2579_s16 = int_to_ptr.vmem [resolvable:$true] %s466_s16 }
 0x1a3   : > { %s487_s28 = sadd.s32 (!%p1094_p2), 34, %s2282_s10  ;;  %s483_s17 = sshll.u32 (!%p1094_p2), %s928_s7, 4  ;;  %s2587_s17 = int_to_ptr.vmem [resolvable:$true] %s483_s17 }
 0x1a4   : > { %s2585_s15 = sld [smem:[#allocation5 + %s487_s28]]  ;;  %s933_s4 = scalar_lea.vmem %s2575_s5, 2 [#allocation2] }
 0x1a5   : > { %s1095_s22 = sshll.u32 %s453_s13, 4  ;;  %s2593_s29 = scalar_lea.sflag [#allocation3], %s452_s9 }
 0x1a6   : > { %s455_s30 = scalar_lea.hbm %s2934_s2, %s1095_s22  ;;  %s2598_s6 = scalar_lea.hbm %s2934_s2, 4096 }
 0x1a7   : > { %s1636_s1 = scalar_lea.hbm %s455_s30, 16  ;;  %p1639_p5 = scmp.lt.s32.totalorder %s455_s30, %s2934_s2 }
 0x1a8   : > { %p1637_p4 = scmp.ne.s32.totalorder %s455_s30, %s1636_s1  ;;  %p1640_p8 = scmp.lt.s32.totalorder %s2598_s6, %s1636_s1 }
 0x1aa   : > { %p1641_p6 = por %p1640_p8, %p1639_p5 }
 0x1ac   : > { %p1642_p11 = pnand %p1641_p6, %p1637_p4 }
 0x1ae   : > { %1645 = shalt.err (!%p1642_p11)  }
 0x1af   : > { %s1646_s9 = scalar_lea.vmem %s2579_s16, 16  ;;  %s2119_s13 = smov [#allocation2]  }
 0x1b0   : > { %p1647_p9 = scmp.ne.s32.totalorder %s2579_s16, %s1646_s9  ;;  %s1648_s23 = sshll.u32 %s2119_s13, 4  ;;  %s2606_s23 = int_to_ptr.vmem [resolvable:$false] %s1648_s23 }
 0x1b1   : > { %s2609_s7 = scalar_lea.vmem %s2606_s23, 512  ;;  %p1651_p12 = scmp.lt.s32.totalorder %s2579_s16, %s2606_s23 }
 0x1b2   : > { %p1652_p10 = scmp.lt.s32.totalorder %s2609_s7, %s1646_s9 }
 0x1b4   : > { %p1653_p13 = por %p1652_p10, %p1651_p12 }
 0x1b6   : > { %p1654_p0 = pnand %p1653_p13, %p1647_p9 }
 0x1b8   : > { %1657 = shalt.err (!%p1654_p0)  }
 0x1b9   : > { %469 = dma.hbm_to_vmem [thread:$0]  %s455_s30, 16, %s2579_s16, %s2593_s29 }
 0x1ba   : > { %s1097_s28 = sshll.u32 %s2581_s26, 4  ;;  %s500_s22 = sshll.u32 %s933_s4, 4  ;;  %s2620_s22 = int_to_ptr.vmem [resolvable:$true] %s500_s22 }
 0x1bb   : > { %s473_s1 = scalar_lea.hbm %s2934_s2, %s1097_s28 }
 0x1bc   : > { %s1658_s3 = scalar_lea.hbm %s473_s1, 16  ;;  %p1661_p2 = scmp.lt.s32.totalorder %s473_s1, %s2934_s2 }
 0x1bd   : > { %p1659_p1 = scmp.ne.s32.totalorder %s473_s1, %s1658_s3  ;;  %p1662_p4 = scmp.lt.s32.totalorder %s2598_s6, %s1658_s3 }
 0x1bf   : > { %p1663_p5 = por %p1662_p4, %p1661_p2 }
 0x1c1   : > { %p1664_p8 = pnand %p1663_p5, %p1659_p1 }
 0x1c3   : > { %1667 = shalt.err (!%p1664_p8)  }
 0x1c4   : > { %s1668_s16 = scalar_lea.vmem %s2587_s17, 16  ;;  %p1673_p11 = scmp.lt.s32.totalorder %s2587_s17, %s2606_s23 }
 0x1c5   : > { %p1669_p6 = scmp.ne.s32.totalorder %s2587_s17, %s1668_s16  ;;  %p1674_p9 = scmp.lt.s32.totalorder %s2609_s7, %s1668_s16 }
 0x1c7   : > { %p1675_p12 = por %p1674_p9, %p1673_p11 }
 0x1c9   : > { %p1676_p10 = pnand %p1675_p12, %p1669_p6 }
 0x1cb   : > { %1679 = shalt.err (!%p1676_p10)  }
 0x1cc   : > { %486 = dma.hbm_to_vmem [thread:$0]  %s473_s1, 16, %s2587_s17, %s2593_s29 }
 0x1cd   : > { %s1099_s26 = sshll.u32 %s2585_s15, 4  ;;  %s504_s30 = sadd.s32 35, %s2282_s10 }
 0x1ce   : > { %s490_s9 = scalar_lea.hbm %s2934_s2, %s1099_s26  ;;  %s505_s13 = sld [smem:[#allocation5 + %s504_s30]] }
 0x1cf   : > { %s1680_s28 = scalar_lea.hbm %s490_s9, 16  ;;  %p1683_p0 = scmp.lt.s32.totalorder %s490_s9, %s2934_s2 }
 0x1d0   : > { %p1681_p13 = scmp.ne.s32.totalorder %s490_s9, %s1680_s28  ;;  %p1684_p1 = scmp.lt.s32.totalorder %s2598_s6, %s1680_s28 }
 0x1d2   : > { %p1685_p2 = por %p1684_p1, %p1683_p0 }
 0x1d4   : > { %p1686_p4 = pnand %p1685_p2, %p1681_p13 }
 0x1d6   : > { %1689 = shalt.err (!%p1686_p4)  }
 0x1d7   : > { %s1690_s17 = scalar_lea.vmem %s2620_s22, 16  ;;  %p1695_p8 = scmp.lt.s32.totalorder %s2620_s22, %s2606_s23 }
 0x1d8   : > { %p1691_p5 = scmp.ne.s32.totalorder %s2620_s22, %s1690_s17  ;;  %p1696_p6 = scmp.lt.s32.totalorder %s2609_s7, %s1690_s17 }
 0x1da   : > { %p1697_p11 = por %p1696_p6, %p1695_p8 }
 0x1dc   : > { %p1698_p9 = pnand %p1697_p11, %p1691_p5 }
 0x1de   : > { %1701 = shalt.err (!%p1698_p9)  }
 0x1df   : > { %503 = dma.hbm_to_vmem [thread:$0]  %s490_s9, 16, %s2620_s22, %s2593_s29 }
 0x1e0   : > { %s938_s15 = scalar_lea.vmem %s2575_s5, 3 [#allocation2]  ;;  %s521_s1 = sadd.s32 36, %s2282_s10 }
 0x1e1   : > { %s517_s3 = sshll.u32 %s938_s15, 4  ;;  %s522_s19 = sld [smem:[#allocation5 + %s521_s1]]  ;;  %s518_s3 = int_to_ptr.vmem [resolvable:$true] %s517_s3 }
 0x1e2   : > { %s943_s20 = scalar_lea.vmem %s2575_s5, 4 [#allocation2]  ;;  %s538_s26 = sadd.s32 37, %s2282_s10 }
 0x1e3   : > { %s534_s16 = sshll.u32 %s943_s20, 4  ;;  %s1101_s30 = sshll.u32 %s505_s13, 4  ;;  %s2653_s16 = int_to_ptr.vmem [resolvable:$true] %s534_s16 }
 0x1e4   : > { %s507_s28 = scalar_lea.hbm %s2934_s2, %s1101_s30  ;;  %s2658_s12 = sld [smem:[#allocation5 + %s538_s26]] }
 0x1e5   : > { %s1702_s8 = scalar_lea.hbm %s507_s28, 16  ;;  %p1705_p10 = scmp.lt.s32.totalorder %s507_s28, %s2934_s2 }
 0x1e6   : > { %p1703_p12 = scmp.ne.s32.totalorder %s507_s28, %s1702_s8  ;;  %p1706_p13 = scmp.lt.s32.totalorder %s2598_s6, %s1702_s8 }
 0x1e8   : > { %p1707_p0 = por %p1706_p13, %p1705_p10 }
 0x1ea   : > { %p1708_p1 = pnand %p1707_p0, %p1703_p12 }
 0x1ec   : > { %1711 = shalt.err (!%p1708_p1)  }
 0x1ed   : > { %s1712_s17 = scalar_lea.vmem %s518_s3, 16  ;;  %p1717_p4 = scmp.lt.s32.totalorder %s518_s3, %s2606_s23 }
 0x1ee   : > { %p1713_p2 = scmp.ne.s32.totalorder %s518_s3, %s1712_s17  ;;  %p1718_p5 = scmp.lt.s32.totalorder %s2609_s7, %s1712_s17 }
 0x1f0   : > { %p1719_p8 = por %p1718_p5, %p1717_p4 }
 0x1f2   : > { %p1720_p6 = pnand %p1719_p8, %p1713_p2 }
 0x1f4   : > { %1723 = shalt.err (!%p1720_p6)  }
 0x1f5   : > { %520 = dma.hbm_to_vmem [thread:$0]  %s507_s28, 16, %s518_s3, %s2593_s29 }
 0x1f6   : > { %s1103_s13 = sshll.u32 %s522_s19, 4  ;;  %s948_s15 = scalar_lea.vmem %s2575_s5, 5 [#allocation2] }
 0x1f7   : > { %s524_s26 = scalar_lea.hbm %s2934_s2, %s1103_s13  ;;  %s551_s30 = sshll.u32 %s948_s15, 4  ;;  %s552_s30 = int_to_ptr.vmem [resolvable:$true] %s551_s30 }
 0x1f8   : > { %s1724_s4 = scalar_lea.hbm %s524_s26, 16  ;;  %p1727_p9 = scmp.lt.s32.totalorder %s524_s26, %s2934_s2 }
 0x1f9   : > { %p1725_p11 = scmp.ne.s32.totalorder %s524_s26, %s1724_s4  ;;  %p1728_p12 = scmp.lt.s32.totalorder %s2598_s6, %s1724_s4 }
 0x1fb   : > { %p1729_p10 = por %p1728_p12, %p1727_p9 }
 0x1fd   : > { %p1730_p13 = pnand %p1729_p10, %p1725_p11 }
 0x1ff   : > { %1733 = shalt.err (!%p1730_p13)  }
 0x200   : > { %s1734_s3 = scalar_lea.vmem %s2653_s16, 16  ;;  %p1739_p1 = scmp.lt.s32.totalorder %s2653_s16, %s2606_s23 }
 0x201   : > { %p1735_p0 = scmp.ne.s32.totalorder %s2653_s16, %s1734_s3  ;;  %p1740_p2 = scmp.lt.s32.totalorder %s2609_s7, %s1734_s3 }
 0x203   : > { %p1741_p4 = por %p1740_p2, %p1739_p1 }
 0x205   : > { %p1742_p5 = pnand %p1741_p4, %p1735_p0 }
 0x207   : > { %1745 = shalt.err (!%p1742_p5)  }
 0x208   : > { %537 = dma.hbm_to_vmem [thread:$0]  %s524_s26, 16, %s2653_s16, %s2593_s29 }
 0x209   : > { %s555_s19 = sadd.s32 38, %s2282_s10  ;;  %s1105_s28 = sshll.u32 %s2658_s12, 4 }
 0x20a   : > { %s556_s22 = sld [smem:[#allocation5 + %s555_s19]]  ;;  %s541_s13 = scalar_lea.hbm %s2934_s2, %s1105_s28 }
 0x20b   : > { %s953_s15 = scalar_lea.vmem %s2575_s5, 6 [#allocation2]  ;;  %s1746_s1 = scalar_lea.hbm %s541_s13, 16 }
 0x20c   : > { %p1747_p8 = scmp.ne.s32.totalorder %s541_s13, %s1746_s1  ;;  %p1749_p6 = scmp.lt.s32.totalorder %s541_s13, %s2934_s2 }
 0x20d   : > { %p1750_p11 = scmp.lt.s32.totalorder %s2598_s6, %s1746_s1 }
 0x20f   : > { %p1751_p9 = por %p1750_p11, %p1749_p6 }
 0x211   : > { %p1752_p12 = pnand %p1751_p9, %p1747_p8 }
 0x213   : > { %1755 = shalt.err (!%p1752_p12)  }
 0x214   : > { %s1756_s16 = scalar_lea.vmem %s552_s30, 16  ;;  %p1761_p13 = scmp.lt.s32.totalorder %s552_s30, %s2606_s23 }
 0x215   : > { %p1757_p10 = scmp.ne.s32.totalorder %s552_s30, %s1756_s16  ;;  %p1762_p0 = scmp.lt.s32.totalorder %s2609_s7, %s1756_s16 }
 0x217   : > { %p1763_p1 = por %p1762_p0, %p1761_p13 }
 0x219   : > { %p1764_p2 = pnand %p1763_p1, %p1757_p10 }
 0x21b   : > { %1767 = shalt.err (!%p1764_p2)  }
 0x21c   : > { %554 = dma.hbm_to_vmem [thread:$0]  %s541_s13, 16, %s552_s30, %s2593_s29 }
 0x21d   : > { %s568_s12 = sshll.u32 %s953_s15, 4  ;;  %s572_s26 = sadd.s32 39, %s2282_s10  ;;  %s569_s12 = int_to_ptr.vmem [resolvable:$true] %s568_s12 }
 0x21e   : > { %s573_s27 = sld [smem:[#allocation5 + %s572_s26]]  ;;  %s958_s8 = scalar_lea.vmem %s2575_s5, 7 [#allocation2] }
 0x21f   : > { %s589_s3 = sadd.s32 40, %s2282_s10  ;;  %s1107_s19 = sshll.u32 %s556_s22, 4 }
 0x220   : > { %s585_s28 = sshll.u32 %s958_s8, 4  ;;  %s558_s1 = scalar_lea.hbm %s2934_s2, %s1107_s19  ;;  %s2701_s28 = int_to_ptr.vmem [resolvable:$true] %s585_s28 }
 0x221   : > { %s1768_s20 = scalar_lea.hbm %s558_s1, 16  ;;  %p1771_p5 = scmp.lt.s32.totalorder %s558_s1, %s2934_s2 }
 0x222   : > { %p1769_p4 = scmp.ne.s32.totalorder %s558_s1, %s1768_s20  ;;  %p1772_p8 = scmp.lt.s32.totalorder %s2598_s6, %s1768_s20 }
 0x224   : > { %p1773_p6 = por %p1772_p8, %p1771_p5 }
 0x226   : > { %p1774_p11 = pnand %p1773_p6, %p1769_p4 }
 0x228   : > { %1777 = shalt.err (!%p1774_p11)  }
 0x229   : > { %s1778_s30 = scalar_lea.vmem %s569_s12, 16  ;;  %p1783_p12 = scmp.lt.s32.totalorder %s569_s12, %s2606_s23 }
 0x22a   : > { %p1779_p9 = scmp.ne.s32.totalorder %s569_s12, %s1778_s30  ;;  %p1784_p10 = scmp.lt.s32.totalorder %s2609_s7, %s1778_s30 }
 0x22c   : > { %p1785_p13 = por %p1784_p10, %p1783_p12 }
 0x22e   : > { %p1786_p0 = pnand %p1785_p13, %p1779_p9 }
 0x230   : > { %1789 = shalt.err (!%p1786_p0)  }
 0x231   : > { %571 = dma.hbm_to_vmem [thread:$0]  %s558_s1, 16, %s569_s12, %s2593_s29 }
 0x232   : > { %s590_s22 = sld [smem:[#allocation5 + %s589_s3]]  ;;  %s963_s13 = scalar_lea.vmem %s2575_s5, 8 [#allocation2] }
 0x233   : > { %s1109_s15 = sshll.u32 %s573_s27, 4  ;;  %s602_s26 = sshll.u32 %s963_s13, 4  ;;  %s2714_s26 = int_to_ptr.vmem [resolvable:$true] %s602_s26 }
 0x234   : > { %s575_s9 = scalar_lea.hbm %s2934_s2, %s1109_s15 }
 0x235   : > { %s1790_s17 = scalar_lea.hbm %s575_s9, 16  ;;  %p1793_p2 = scmp.lt.s32.totalorder %s575_s9, %s2934_s2 }
 0x236   : > { %p1791_p1 = scmp.ne.s32.totalorder %s575_s9, %s1790_s17  ;;  %p1794_p4 = scmp.lt.s32.totalorder %s2598_s6, %s1790_s17 }
 0x238   : > { %p1795_p5 = por %p1794_p4, %p1793_p2 }
 0x23a   : > { %p1796_p8 = pnand %p1795_p5, %p1791_p1 }
 0x23c   : > { %1799 = shalt.err (!%p1796_p8)  }
 0x23d   : > { %s1800_s12 = scalar_lea.vmem %s2701_s28, 16  ;;  %p1805_p11 = scmp.lt.s32.totalorder %s2701_s28, %s2606_s23 }
 0x23e   : > { %p1801_p6 = scmp.ne.s32.totalorder %s2701_s28, %s1800_s12  ;;  %p1806_p9 = scmp.lt.s32.totalorder %s2609_s7, %s1800_s12 }
 0x240   : > { %p1807_p12 = por %p1806_p9, %p1805_p11 }
 0x242   : > { %p1808_p10 = pnand %p1807_p12, %p1801_p6 }
 0x244   : > { %1811 = shalt.err (!%p1808_p10)  }
 0x245   : > { %588 = dma.hbm_to_vmem [thread:$0]  %s575_s9, 16, %s2701_s28, %s2593_s29 }
 0x246   : > { %s606_s27 = sadd.s32 41, %s2282_s10  ;;  %s968_s3 = scalar_lea.vmem %s2575_s5, 9 [#allocation2] }
 0x247   : > { %s607_s1 = sld [smem:[#allocation5 + %s606_s27]]  ;;  %s619_s16 = sshll.u32 %s968_s3, 4  ;;  %s2729_s16 = int_to_ptr.vmem [resolvable:$true] %s619_s16 }
 0x248   : > { %s1111_s30 = sshll.u32 %s590_s22, 4  ;;  %s623_s19 = sadd.s32 42, %s2282_s10 }
 0x249   : > { %s592_s8 = scalar_lea.hbm %s2934_s2, %s1111_s30 }
 0x24a   : > { %s1812_s17 = scalar_lea.hbm %s592_s8, 16  ;;  %p1815_p0 = scmp.lt.s32.totalorder %s592_s8, %s2934_s2 }
 0x24b   : > { %p1813_p13 = scmp.ne.s32.totalorder %s592_s8, %s1812_s17  ;;  %p1816_p1 = scmp.lt.s32.totalorder %s2598_s6, %s1812_s17 }
 0x24d   : > { %p1817_p2 = por %p1816_p1, %p1815_p0 }
 0x24f   : > { %p1818_p4 = pnand %p1817_p2, %p1813_p13 }
 0x251   : > { %1821 = shalt.err (!%p1818_p4)  }
 0x252   : > { %s1822_s28 = scalar_lea.vmem %s2714_s26, 16  ;;  %p1827_p8 = scmp.lt.s32.totalorder %s2714_s26, %s2606_s23 }
 0x253   : > { %p1823_p5 = scmp.ne.s32.totalorder %s2714_s26, %s1822_s28  ;;  %p1828_p6 = scmp.lt.s32.totalorder %s2609_s7, %s1822_s28 }
 0x255   : > { %p1829_p11 = por %p1828_p6, %p1827_p8 }
 0x257   : > { %p1830_p9 = pnand %p1829_p11, %p1823_p5 }
 0x259   : > { %1833 = shalt.err (!%p1830_p9)  }
 0x25a   : > { %605 = dma.hbm_to_vmem [thread:$0]  %s592_s8, 16, %s2714_s26, %s2593_s29 }
 0x25b   : > { %s624_s22 = sld [smem:[#allocation5 + %s623_s19]]  ;;  %s973_s9 = scalar_lea.vmem %s2575_s5, 10 [#allocation2] }
 0x25c   : > { %s636_s12 = sshll.u32 %s973_s9, 4  ;;  %s640_s27 = sadd.s32 43, %s2282_s10  ;;  %s2748_s12 = int_to_ptr.vmem [resolvable:$true] %s636_s12 }
 0x25d   : > { %s1113_s3 = sshll.u32 %s607_s1, 4  ;;  %s2753_s17 = sld [smem:[#allocation5 + %s640_s27]] }
 0x25e   : > { %s609_s15 = scalar_lea.hbm %s2934_s2, %s1113_s3 }
 0x25f   : > { %s1834_s20 = scalar_lea.hbm %s609_s15, 16  ;;  %p1837_p10 = scmp.lt.s32.totalorder %s609_s15, %s2934_s2 }
 0x260   : > { %p1835_p12 = scmp.ne.s32.totalorder %s609_s15, %s1834_s20  ;;  %p1838_p13 = scmp.lt.s32.totalorder %s2598_s6, %s1834_s20 }
 0x262   : > { %p1839_p0 = por %p1838_p13, %p1837_p10 }
 0x264   : > { %p1840_p1 = pnand %p1839_p0, %p1835_p12 }
 0x266   : > { %1843 = shalt.err (!%p1840_p1)  }
 0x267   : > { %s1844_s26 = scalar_lea.vmem %s2729_s16, 16  ;;  %p1849_p4 = scmp.lt.s32.totalorder %s2729_s16, %s2606_s23 }
 0x268   : > { %p1845_p2 = scmp.ne.s32.totalorder %s2729_s16, %s1844_s26  ;;  %p1850_p5 = scmp.lt.s32.totalorder %s2609_s7, %s1844_s26 }
 0x26a   : > { %p1851_p8 = por %p1850_p5, %p1849_p4 }
 0x26c   : > { %p1852_p6 = pnand %p1851_p8, %p1845_p2 }
 0x26e   : > { %1855 = shalt.err (!%p1852_p6)  }
 0x26f   : > { %622 = dma.hbm_to_vmem [thread:$0]  %s609_s15, 16, %s2729_s16, %s2593_s29 }
 0x270   : > { %s978_s1 = scalar_lea.vmem %s2575_s5, 11 [#allocation2]  ;;  %s657_s8 = sadd.s32 44, %s2282_s10 }
 0x271   : > { %s1115_s19 = sshll.u32 %s624_s22, 4  ;;  %s653_s9 = sshll.u32 %s978_s1, 4  ;;  %s2771_s9 = int_to_ptr.vmem [resolvable:$true] %s653_s9 }
 0x272   : > { %s626_s30 = scalar_lea.hbm %s2934_s2, %s1115_s19 }
 0x273   : > { %s1856_s13 = scalar_lea.hbm %s626_s30, 16  ;;  %p1859_p9 = scmp.lt.s32.totalorder %s626_s30, %s2934_s2 }
 0x274   : > { %p1857_p11 = scmp.ne.s32.totalorder %s626_s30, %s1856_s13  ;;  %p1860_p12 = scmp.lt.s32.totalorder %s2598_s6, %s1856_s13 }
 0x276   : > { %p1861_p10 = por %p1860_p12, %p1859_p9 }
 0x278   : > { %p1862_p13 = pnand %p1861_p10, %p1857_p11 }
 0x27a   : > { %1865 = shalt.err (!%p1862_p13)  }
 0x27b   : > { %s1866_s16 = scalar_lea.vmem %s2748_s12, 16  ;;  %p1871_p1 = scmp.lt.s32.totalorder %s2748_s12, %s2606_s23 }
 0x27c   : > { %p1867_p0 = scmp.ne.s32.totalorder %s2748_s12, %s1866_s16  ;;  %p1872_p2 = scmp.lt.s32.totalorder %s2609_s7, %s1866_s16 }
 0x27e   : > { %p1873_p4 = por %p1872_p2, %p1871_p1 }
 0x280   : > { %p1874_p5 = pnand %p1873_p4, %p1867_p0 }
 0x282   : > { %1877 = shalt.err (!%p1874_p5)  }
 0x283   : > { %639 = dma.hbm_to_vmem [thread:$0]  %s626_s30, 16, %s2748_s12, %s2593_s29 }
 0x284   : > { %s1117_s22 = sshll.u32 %s2753_s17, 4  ;;  %s658_s15 = sld [smem:[#allocation5 + %s657_s8]] }
 0x285   : > { %s643_s1 = scalar_lea.hbm %s2934_s2, %s1117_s22  ;;  %s983_s19 = scalar_lea.vmem %s2575_s5, 12 [#allocation2] }
 0x286   : > { %s1878_s27 = scalar_lea.hbm %s643_s1, 16  ;;  %p1881_p6 = scmp.lt.s32.totalorder %s643_s1, %s2934_s2 }
 0x287   : > { %p1879_p8 = scmp.ne.s32.totalorder %s643_s1, %s1878_s27  ;;  %p1882_p11 = scmp.lt.s32.totalorder %s2598_s6, %s1878_s27 }
 0x289   : > { %p1883_p9 = por %p1882_p11, %p1881_p6 }
 0x28b   : > { %p1884_p12 = pnand %p1883_p9, %p1879_p8 }
 0x28d   : > { %1887 = shalt.err (!%p1884_p12)  }
 0x28e   : > { %s1888_s12 = scalar_lea.vmem %s2771_s9, 16  ;;  %p1893_p13 = scmp.lt.s32.totalorder %s2771_s9, %s2606_s23 }
 0x28f   : > { %p1889_p10 = scmp.ne.s32.totalorder %s2771_s9, %s1888_s12  ;;  %p1894_p0 = scmp.lt.s32.totalorder %s2609_s7, %s1888_s12 }
 0x291   : > { %p1895_p1 = por %p1894_p0, %p1893_p13 }
 0x293   : > { %p1896_p2 = pnand %p1895_p1, %p1889_p10 }
 0x295   : > { %1899 = shalt.err (!%p1896_p2)  }
 0x296   : > { %656 = dma.hbm_to_vmem [thread:$0]  %s643_s1, 16, %s2771_s9, %s2593_s29 }
 0x297   : > { %s670_s17 = sshll.u32 %s983_s19, 4  ;;  %s674_s8 = sadd.s32 45, %s2282_s10  ;;  %s671_s17 = int_to_ptr.vmem [resolvable:$true] %s670_s17 }
 0x298   : > { %s675_s30 = sld [smem:[#allocation5 + %s674_s8]]  ;;  %s988_s20 = scalar_lea.vmem %s2575_s5, 13 [#allocation2] }
 0x299   : > { %s691_s4 = sadd.s32 46, %s2282_s10  ;;  %s1119_s16 = sshll.u32 %s658_s15, 4 }
 0x29a   : > { %s687_s22 = sshll.u32 %s988_s20, 4  ;;  %s660_s27 = scalar_lea.hbm %s2934_s2, %s1119_s16  ;;  %s2806_s22 = int_to_ptr.vmem [resolvable:$true] %s687_s22 }
 0x29b   : > { %s1900_s3 = scalar_lea.hbm %s660_s27, 16  ;;  %p1903_p5 = scmp.lt.s32.totalorder %s660_s27, %s2934_s2 }
 0x29c   : > { %p1901_p4 = scmp.ne.s32.totalorder %s660_s27, %s1900_s3  ;;  %p1904_p8 = scmp.lt.s32.totalorder %s2598_s6, %s1900_s3 }
 0x29e   : > { %p1905_p6 = por %p1904_p8, %p1903_p5 }
 0x2a0   : > { %p1906_p11 = pnand %p1905_p6, %p1901_p4 }
 0x2a2   : > { %1909 = shalt.err (!%p1906_p11)  }
 0x2a3   : > { %s1910_s9 = scalar_lea.vmem %s671_s17, 16  ;;  %p1915_p12 = scmp.lt.s32.totalorder %s671_s17, %s2606_s23 }
 0x2a4   : > { %p1911_p9 = scmp.ne.s32.totalorder %s671_s17, %s1910_s9  ;;  %p1916_p10 = scmp.lt.s32.totalorder %s2609_s7, %s1910_s9 }
 0x2a6   : > { %p1917_p13 = por %p1916_p10, %p1915_p12 }
 0x2a8   : > { %p1918_p0 = pnand %p1917_p13, %p1911_p9 }
 0x2aa   : > { %1921 = shalt.err (!%p1918_p0)  }
 0x2ab   : > { %673 = dma.hbm_to_vmem [thread:$0]  %s660_s27, 16, %s671_s17, %s2593_s29 }
 0x2ac   : > { %s692_s15 = sld [smem:[#allocation5 + %s691_s4]]  ;;  %s993_s1 = scalar_lea.vmem %s2575_s5, 14 [#allocation2] }
 0x2ad   : > { %s1121_s19 = sshll.u32 %s675_s30, 4  ;;  %s704_s28 = sshll.u32 %s993_s1, 4  ;;  %s705_s28 = int_to_ptr.vmem [resolvable:$true] %s704_s28 }
 0x2ae   : > { %s677_s16 = scalar_lea.hbm %s2934_s2, %s1121_s19 }
 0x2af   : > { %s1922_s26 = scalar_lea.hbm %s677_s16, 16  ;;  %p1925_p2 = scmp.lt.s32.totalorder %s677_s16, %s2934_s2 }
 0x2b0   : > { %p1923_p1 = scmp.ne.s32.totalorder %s677_s16, %s1922_s26  ;;  %p1926_p4 = scmp.lt.s32.totalorder %s2598_s6, %s1922_s26 }
 0x2b2   : > { %p1927_p5 = por %p1926_p4, %p1925_p2 }
 0x2b4   : > { %p1928_p8 = pnand %p1927_p5, %p1923_p1 }
 0x2b6   : > { %1931 = shalt.err (!%p1928_p8)  }
 0x2b7   : > { %s1932_s17 = scalar_lea.vmem %s2806_s22, 16  ;;  %p1937_p11 = scmp.lt.s32.totalorder %s2806_s22, %s2606_s23 }
 0x2b8   : > { %p1933_p6 = scmp.ne.s32.totalorder %s2806_s22, %s1932_s17  ;;  %p1938_p9 = scmp.lt.s32.totalorder %s2609_s7, %s1932_s17 }
 0x2ba   : > { %p1939_p12 = por %p1938_p9, %p1937_p11 }
 0x2bc   : > { %p1940_p10 = pnand %p1939_p12, %p1933_p6 }
 0x2be   : > { %1943 = shalt.err (!%p1940_p10)  }
 0x2bf   : > { %690 = dma.hbm_to_vmem [thread:$0]  %s677_s16, 16, %s2806_s22, %s2593_s29 }
 0x2c0   : > { %s708_s30 = sadd.s32 47, %s2282_s10  ;;  %s998_s4 = scalar_lea.vmem %s2575_s5, 15 [#allocation2] }
 0x2c1   : > { %s709_s27 = sld [smem:[#allocation5 + %s708_s30]]  ;;  %s1123_s12 = sshll.u32 %s692_s15, 4 }
 0x2c2   : > { %s694_s19 = scalar_lea.hbm %s2934_s2, %s1123_s12  ;;  %s721_s8 = sshll.u32 %s998_s4, 4  ;;  %s722_s8 = int_to_ptr.vmem [resolvable:$true] %s721_s8 }
 0x2c3   : > { %s1944_s20 = scalar_lea.hbm %s694_s19, 16  ;;  %p1947_p0 = scmp.lt.s32.totalorder %s694_s19, %s2934_s2 }
 0x2c4   : > { %p1945_p13 = scmp.ne.s32.totalorder %s694_s19, %s1944_s20  ;;  %p1948_p1 = scmp.lt.s32.totalorder %s2598_s6, %s1944_s20 }
 0x2c6   : > { %p1949_p2 = por %p1948_p1, %p1947_p0 }
 0x2c8   : > { %p1950_p4 = pnand %p1949_p2, %p1945_p13 }
 0x2ca   : > { %1953 = shalt.err (!%p1950_p4)  }
 0x2cb   : > { %s1954_s10 = scalar_lea.vmem %s705_s28, 16  ;;  %p1959_p8 = scmp.lt.s32.totalorder %s705_s28, %s2606_s23 }
 0x2cc   : > { %p1955_p5 = scmp.ne.s32.totalorder %s705_s28, %s1954_s10  ;;  %p1960_p6 = scmp.lt.s32.totalorder %s2609_s7, %s1954_s10 }
 0x2ce   : > { %p1961_p11 = por %p1960_p6, %p1959_p8 }
 0x2d0   : > { %p1962_p9 = pnand %p1961_p11, %p1955_p5 }
 0x2d2   : > { %1965 = shalt.err (!%p1962_p9)  }
 0x2d3   : > { %707 = dma.hbm_to_vmem [thread:$0]  %s694_s19, 16, %s705_s28, %s2593_s29 }
 0x2d4   : > { %s1125_s5 = sshll.u32 %s709_s27, 4 }
 0x2d5   : > { %s711_s16 = scalar_lea.hbm %s2934_s2, %s1125_s5 }
 0x2d6   : > { %s1966_s13 = scalar_lea.hbm %s711_s16, 16  ;;  %p1969_p10 = scmp.lt.s32.totalorder %s711_s16, %s2934_s2 }
 0x2d7   : > { %p1967_p12 = scmp.ne.s32.totalorder %s711_s16, %s1966_s13  ;;  %p1970_p13 = scmp.lt.s32.totalorder %s2598_s6, %s1966_s13 }
 0x2d9   : > { %p1971_p0 = por %p1970_p13, %p1969_p10 }
 0x2db   : > { %p1972_p1 = pnand %p1971_p0, %p1967_p12 }
 0x2dd   : > { %1975 = shalt.err (!%p1972_p1)  }
 0x2de   : > { %s1976_s4 = scalar_lea.vmem %s722_s8, 16  ;;  %p1981_p4 = scmp.lt.s32.totalorder %s722_s8, %s2606_s23 }
 0x2df   : > { %p1977_p2 = scmp.ne.s32.totalorder %s722_s8, %s1976_s4  ;;  %p1982_p5 = scmp.lt.s32.totalorder %s2609_s7, %s1976_s4 }
 0x2e1   : > { %p1983_p8 = por %p1982_p5, %p1981_p4 }
 0x2e3   : > { %p1984_p6 = pnand %p1983_p8, %p1977_p2 }
 0x2e5   : > { %1987 = shalt.err (!%p1984_p6)  }
 0x2e6   : > { %724 = dma.hbm_to_vmem [thread:$0]  %s711_s16, 16, %s722_s8, %s2593_s29 }
 0x2e7 PF: > { %s725_s28 = scalar_lea.sflag [#allocation3], %s2995_s11 }
 0x2e8   : > { %2064 = dma.done.wait %s725_s28, 256 }
 0x2e9   : > { %2065 = vsyncadd %s725_s28, 4294967040  ;;  %s1127_s6 = sshll.u32 %s2995_s11, 4  ;;  %s1129_s23 = sshll.u32 %s2100_s25, 1 }
 0x2ea   : > { %s1130_s7 = sshll.u32 %s2096_s24, 2  ;;  %s785_s12 = sshll.u32 %s2289_s18, 4  ;;  %s2861_s12 = int_to_ptr.vmem [resolvable:$true] %s785_s12 }
 0x2eb   : > { %s782_s27 = sadd.s32 %s1130_s7, %s1129_s23  ;;  %s760_s9 = scalar_lea.vmem [#allocation2], %s1127_s6 }
 0x2ec   : > { %s1131_s29 = sshll.u32 %s782_s27, 7  ;;  %v761_v0 = vld [vmem:[%s760_s9] sm:$0xff]  ;;  %s2970_s1 = scalar_lea.vmem [#allocation7], %s2270_s21  ;;  %v762_v2 = vld [vmem:[%s760_s9 + $0x8] sm:$0xff] }
 0x2ed   : > { %v763_v1 = vld [vmem:[%s2970_s1] sm:$0xff]  ;;  %s2971_s19 = smov %s2970_s1  ;;  %s2972_s11 = sld [smem:[#allocation94_spill]] }
 0x2ee   : > { %v765_v3 = vadd.f32 %v763_v1, %v761_v0  ;;  %v764_v4 = vld [vmem:[%s2971_s19 + $0x8] sm:$0xff]  ;;  %s2973_s20 = sand.u32 1, %s2076_s0   ;;  %s1988_s3 = scalar_lea.vmem %s2861_s12, 256 }
 0x2ef   : > { %v766_v5 = vadd.f32 %v764_v4, %v762_v2  ;;  %s2872_s26 = scalar_lea.sflag [#allocation9], %s2973_s20  ;;  %p1989_p11 = scmp.ne.s32.totalorder %s2861_s12, %s1988_s3 }
 0x2f0   : > { %767 = vst [vmem:[%s2289_s18] sm:$0xff] %v765_v3  ;;  %s2120_s21 = smov [#allocation10]  }
 0x2f1   : > { %768 = vst [vmem:[%s2289_s18 + $0x8] sm:$0xff] %v766_v5  ;;  %p1990_p9 = pnand %p1989_p11, %p2233_p3  ;;  %s1992_s10 = sshll.u32 %s2120_s21, 4  ;;  %s1993_s10 = int_to_ptr.vmem [resolvable:$false] %s1992_s10 }
 0x2f2   : > { %s1994_s5 = scalar_lea.vmem %s1993_s10, 512  ;;  %p1995_p10 = scmp.lt.s32.totalorder %s2861_s12, %s1993_s10 }
 0x2f3   : > { %s2866_s8 = scalar_lea.hbm %s2972_s11, %s1131_s29  ;;  %p1991_p12 = pneg %p1990_p9 }
 0x2f4   : > { %p1996_p13 = scmp.lt.s32.totalorder %s1994_s5, %s1988_s3 }
 0x2f6   : > { %p1997_p0 = por %p1996_p13, %p1995_p10 }
 0x2f8   : > { %p1998_p1 = pnand %p1997_p0, %p1991_p12 }
 0x2fa   : > { %2001 = shalt.err (!%p1998_p1)
}
 0x2fb   : > { %s2002_s18 = scalar_lea.hbm %s2866_s8, 256  ;;  %s2006_s16 = scalar_lea.hbm %s2972_s11, 2048 }
 0x2fc   : > { %p2003_p2 = scmp.ne.s32.totalorder %s2866_s8, %s2002_s18  ;;  %p2007_p8 = scmp.lt.s32.totalorder %s2866_s8, %s2972_s11 }
 0x2fd   : > { %p2008_p6 = scmp.lt.s32.totalorder %s2006_s16, %s2002_s18 }
 0x2fe   : > { %p2004_p4 = pnand %p2003_p2, %p2233_p3 }
 0x2ff   : > { %p2009_p11 = por %p2008_p6, %p2007_p8 }
 0x300   : > { %p2005_p5 = pneg %p2004_p4 }
 0x302   : > { %p2010_p9 = pnand %p2009_p11, %p2005_p5 }
 0x304   : > { %2013 = shalt.err (!%p2010_p9)
}
 0x305   : > { %s2121_s30 = smov 128   ;;  %s2122_s4 = smov 8  }
 0x306   : > { %1139 = dma.vmem_to_hbm [thread:$0]  (%p2233_p3), %s2861_s12, 256, %s2866_s8, %s2872_s26, %s2121_s30, %s2121_s30, %s2122_s4  }
 0x307 PF: > { %s2974_s28 = sld [smem:[#allocation87_spill]] }
 0x308   : > { %s2975_s6 = sld [smem:[#allocation81_spill]] }
 0x30d   : > { %p1150_p12 = scmp.ge.s32.totalorder %s2974_s28, 2 }
 0x30e   : > { %s800_s7 = sand.u32 1, %s2975_s6  }
 0x30f   : > { %p1146_p10 = pnand %p1150_p12, %p2246_p7  ;;  %s801_s27 = scalar_lea.sflag [#allocation9], %s800_s7 }
 0x311   : > { %p1147_p13 = pneg %p1146_p10 }
 0x313   : > { %2067 = dma.done.wait (%p1147_p13), %s801_s27, 256  }
 0x314   : > { %2069 = vsyncadd (%p1147_p13), %s801_s27, 4294967040  ;;  %s27_s28 = sadd.s32 1, %s2974_s28   ;;  %s2977_s29 = sld [smem:[#allocation82_spill]] }
 0x315   : > { %p24_p0 = scmp.ge.s32.totalorder %s27_s28, 10   ;;  %s2978_s20 = sld [smem:[#allocation91_spill]] }
 0x316   : > { %s2979_s21 = sld [smem:[#allocation83_spill]]  ;;  %s2986_s19 = smov %s2076_s0 }
 0x317   : > { %s2980_s22 = sld [smem:[#allocation84_spill]] }
 0x318   : > { %s2981_s23 = sld [smem:[#allocation90_spill]]  ;;  %26 = sbr.rel (!%p24_p0) target bundleno = 25 (0x19), region = 274 }
 0x319   : > { %s2982_s24 = sld [smem:[#allocation85_spill]] }
 0x31a   : > { %s2983_s25 = sld [smem:[#allocation86_spill]]  ;;  %s2987_s0 = smov %s2977_s29 }
 0x31b   : > { %s2984_s26 = sld [smem:[#allocation88_spill]] }
 0x31c   : > { %s2985_s27 = sld [smem:[#allocation89_spill]] }
 0x31d   :  { %806 = vsyncpa [#allocation8], 1 }
 0x31e   :  { %808 = vsyncpa [#allocation8 + $0x1], 1 }
 0x31f   :  { %809 = vsyncpa [#allocation9], 1 }
 0x320   :  { %811 = vsyncpa [#allocation9 + $0x1], 1 }
 0x321   :  { %812 = vsyncmov [#allocation3] }
 0x324   :  { %s813_s14 = vpop.sfrf %812 }
 0x325   :  { %p1134_p3 = scmp.ne.s32.totalorder %s813_s14, 0 }
 0x327   :  { %817 = shalt.err (%p1134_p3)  }
 0x328   :  { %819 = vsyncmov [#allocation3 + $0x1] }
 0x32b   :  { %s820_s12 = vpop.sfrf %819 }
 0x32c   :  { %p1135_p7 = scmp.ne.s32.totalorder %s820_s12, 0 }
 0x32e   :  { %824 = shalt.err (%p1135_p7)  }

</bundles_post_ra>
